<compile_context>
chip_gen: v6e
topology: v6e:2x2x1
jax: 0.10.0
libtpu: 0.0.40
codegen_flags: <defaults>
</compile_context>

<pallas_src>
import functools

import jax
import jax.numpy as jnp
from jax.experimental import pallas as pl
from jax.experimental.pallas import tpu as pltpu


def ges_kernel(item_ref, side_ref, ctx_ref, out_ref, *, inv_scale):
    f32 = jnp.float32
    # Upcast bf16 streams to f32 right after load (v5e VPU has no bf16 arithmetic;
    # this is cheap and the kernel is memory-bound anyway).
    item = item_ref[...].astype(f32)          # [TB, D]
    side = side_ref[...].astype(f32)          # [TB, D]  (pre-summed / pre-meaned side info)
    hidden = (item + side) * inv_scale        # [TB, D]  == (item + sum(sides)) / (n_side + 1)

    ctx = ctx_ref[...].astype(f32)            # [TB, Cp, D]
    # logits[b, c] = hidden[b, :] . ctx[b, c, :]   (the reference bmm, batched per row)
    logits = jnp.sum(ctx * hidden[:, None, :], axis=-1)   # [TB, Cp]

    out_ref[...] = jax.nn.sigmoid(logits).astype(out_ref.dtype)


def _pad_axis(x, axis, target):
    pad = target - x.shape[axis]
    if pad <= 0:
        return x
    widths = [(0, 0)] * x.ndim
    widths[axis] = (0, pad)
    return jnp.pad(x, widths)


def ges_forward(item_in_tbl, item_out_tbl, side_tbls,
                central_items, central_side_informations, context_items,
                *, block_b=128):
    stream = jnp.bfloat16  # halve HBM traffic on all streamed embeddings

    # --- glue (XLA): row gathers, mean-over-L pre-reduction, per-table pre-sum ---
    item_emb = jnp.take(item_in_tbl, central_items, axis=0)                 # [B, D] f32
    side_sum = jnp.zeros_like(item_emb)
    for tbl, idx in zip(side_tbls, central_side_informations):
        e = jnp.take(tbl, idx, axis=0)                                      # [B, D] or [B, L, D]
        if e.ndim == 3:
            e = e.mean(axis=1)                                              # fold mean over L here
        side_sum = side_sum + e
    ctx_emb = jnp.take(item_out_tbl, context_items, axis=0)                 # [B, C, D]
    n_side = len(side_tbls)

    item_emb = item_emb.astype(stream)
    side_sum = side_sum.astype(stream)
    ctx_emb = ctx_emb.astype(stream)

    B, D = item_emb.shape
    C = ctx_emb.shape[1]

    # Batch tile: multiple of 8 (f32 sublane rule); pad B up to a whole number of tiles.
    TB = max(8, (block_b // 8) * 8)
    num_b = -(-B // TB)
    B_pad = num_b * TB
    # Pad C only to a multiple of 8 (sublane dim of the ctx block). The output block covers
    # the full C extent, so no lane padding / write amplification for small C.
    C_pad = -(-C // 8) * 8

    item_emb = _pad_axis(item_emb, 0, B_pad)
    side_sum = _pad_axis(side_sum, 0, B_pad)
    ctx_emb = _pad_axis(_pad_axis(ctx_emb, 1, C_pad), 0, B_pad)

    bytes_accessed = (2 * (2 * B_pad * D + B_pad * C_pad * D)   # bf16 input streams
                      + 4 * B_pad * C_pad)                      # f32 output
    cost = pl.CostEstimate(
        flops=2 * B_pad * C_pad * D + 3 * B_pad * D,
        transcendentals=B_pad * C_pad,
        bytes_accessed=bytes_accessed)

    kernel = functools.partial(ges_kernel, inv_scale=1.0 / float(n_side + 1))

    out_padded = pl.pallas_call(
        kernel,
        out_shape=jax.ShapeDtypeStruct((B_pad, C_pad), jnp.float32),
        grid=(num_b,),
        in_specs=[
            pl.BlockSpec((TB, D), lambda i: (i, 0)),           # central item embedding
            pl.BlockSpec((TB, D), lambda i: (i, 0)),           # pre-summed side-info embedding
            pl.BlockSpec((TB, C_pad, D), lambda i: (i, 0, 0)),  # gathered context embeddings
        ],
        out_specs=pl.BlockSpec((TB, C_pad), lambda i: (i, 0)),
        compiler_params=pltpu.CompilerParams(
            dimension_semantics=("parallel",),                 # shard batch tiles across TCs
            vmem_limit_bytes=32 * 1024 * 1024),                # tiny blocks; safe on v5e..v7x
        cost_estimate=cost,
    )(item_emb, side_sum, ctx_emb)

    return out_padded[:B, :C]


if __name__ == "__main__":
    # Small, module-consistent shapes; B/TB chosen so the grid has 4 pipelined "parallel" steps.
    num_items = 1000
    side_info_vocab_sizes = [16, 24]
    emb_dims = 128          # module default is 100, but emb_dims is a free parameter
    B, C, L = 512, 8, 4     # batch, #context items, side-info sequence length
    TB = 128                # batch tile -> grid of 4 steps

    init_range = 0.5 / emb_dims
    key = jax.random.PRNGKey(0)
    k = jax.random.split(key, 8)

    # Deterministic parameter init, mirroring uniform_(-init_range, init_range).
    item_in_tbl = jax.random.uniform(k[0], (num_items, emb_dims), jnp.float32,
                                     -init_range, init_range)
    item_out_tbl = jax.random.uniform(k[1], (num_items, emb_dims), jnp.float32,
                                      -init_range, init_range)
    side_tbls = [
        jax.random.uniform(k[2], (side_info_vocab_sizes[0], emb_dims), jnp.float32,
                           -init_range, init_range),
        jax.random.uniform(k[3], (side_info_vocab_sizes[1], emb_dims), jnp.float32,
                           -init_range, init_range),
    ]

    # Inputs.
    central_items = jax.random.randint(k[4], (B,), 0, num_items)
    side0 = jax.random.randint(k[5], (B, L), 0, side_info_vocab_sizes[0])  # 3-D emb -> mean path
    side1 = jax.random.randint(k[6], (B,), 0, side_info_vocab_sizes[1])    # 2-D emb path
    context_items = jax.random.randint(k[7], (B, C), 0, num_items)

    out = ges_forward(item_in_tbl, item_out_tbl, side_tbls,
                      central_items, [side0, side1], context_items, block_b=TB)
    out = jax.block_until_ready(out)

    # Pure-JAX reference using the same bf16-rounded streams the kernel consumes.
    def rt(x):
        return x.astype(jnp.bfloat16).astype(jnp.float32)

    item_f = rt(item_in_tbl[central_items])
    side_sum_f = rt(side_tbls[0][side0].mean(axis=1) + side_tbls[1][side1])
    hidden = (item_f + side_sum_f) / 3.0
    ctx_f = rt(item_out_tbl[context_items])
    ref = jax.nn.sigmoid(jnp.sum(hidden[:, None, :] * ctx_f, axis=-1))

    assert out.shape == (B, C)
    assert jnp.allclose(out, ref, atol=1e-3), "mismatch vs reference"

    print("KERNEL_OK")
</pallas_src>

<mosaic_0001>
module attributes {stable_mosaic.version = 11 : i64} {
  func.func @ges_kernel(%arg0: i32, %arg1: memref<128x128xbf16, #tpu.memory_space<vmem>>, %arg2: memref<128x128xbf16, #tpu.memory_space<vmem>>, %arg3: memref<128x8x128xbf16, #tpu.memory_space<vmem>>, %arg4: memref<128x8xf32, #tpu.memory_space<vmem>>) attributes {dimension_semantics = [#tpu.dimension_semantics<parallel>], iteration_bounds = array<i64: 4>, scalar_prefetch = 0 : i64, scratch_operands = 0 : i64, tpu.core_type = #tpu.core_type<tc>, window_params = [{transform_indices = @transform_0, window_bounds = array<i64: 128, 128>}, {transform_indices = @transform_1, window_bounds = array<i64: 128, 128>}, {transform_indices = @transform_2, window_bounds = array<i64: 128, 8, 128>}, {transform_indices = @transform_3, window_bounds = array<i64: 128, 8>}]} {
    %c0 = arith.constant 0 : index
    %c0_0 = arith.constant 0 : index
    %0 = vector.load %arg1[%c0, %c0_0] : memref<128x128xbf16, #tpu.memory_space<vmem>>, vector<128x128xbf16>
    %1 = arith.extf %0 : vector<128x128xbf16> to vector<128x128xf32>
    %c0_1 = arith.constant 0 : index
    %c0_2 = arith.constant 0 : index
    %2 = vector.load %arg2[%c0_1, %c0_2] : memref<128x128xbf16, #tpu.memory_space<vmem>>, vector<128x128xbf16>
    %3 = arith.extf %2 : vector<128x128xbf16> to vector<128x128xf32>
    %4 = arith.addf %1, %3 : vector<128x128xf32>
    %cst = arith.constant 0.333333343 : f32
    %5 = vector.broadcast %cst : f32 to vector<128x128xf32>
    %6 = arith.mulf %4, %5 : vector<128x128xf32>
    %c0_3 = arith.constant 0 : index
    %c0_4 = arith.constant 0 : index
    %c0_5 = arith.constant 0 : index
    %7 = vector.load %arg3[%c0_3, %c0_4, %c0_5] : memref<128x8x128xbf16, #tpu.memory_space<vmem>>, vector<128x8x128xbf16>
    %8 = arith.extf %7 : vector<128x8x128xbf16> to vector<128x8x128xf32>
    %9 = vector.shape_cast %6 : vector<128x128xf32> to vector<128x1x128xf32>
    %10 = vector.broadcast %9 : vector<128x1x128xf32> to vector<128x8x128xf32>
    %11 = arith.mulf %8, %10 : vector<128x8x128xf32>
    %cst_6 = arith.constant dense<0.000000e+00> : vector<128x8xf32>
    %12 = vector.multi_reduction <add>, %11, %cst_6 [2] : vector<128x8x128xf32> to vector<128x8xf32>
    %13 = arith.negf %12 : vector<128x8xf32>
    %14 = math.exp %13 : vector<128x8xf32>
    %cst_7 = arith.constant 1.000000e+00 : f32
    %15 = vector.broadcast %cst_7 : f32 to vector<128x8xf32>
    %16 = arith.addf %15, %14 : vector<128x8xf32>
    %17 = arith.divf %15, %16 : vector<128x8xf32>
    %c0_8 = arith.constant 0 : index
    %c0_9 = arith.constant 0 : index
    %18 = vector.load %arg4[%c0_8, %c0_9] : memref<128x8xf32, #tpu.memory_space<vmem>>, vector<128x8xf32>
    tpu.vector_store %arg4[%c0_8, %c0_9], %17 {strides = array<i32>} : memref<128x8xf32, #tpu.memory_space<vmem>>, vector<128x8xf32>,
    return
  }
  func.func @transform_0(%arg0: i32) -> (i32, i32) {
    %c0_i32 = arith.constant 0 : i32
    %c0_i32_0 = arith.constant 0 : i32
    return %arg0, %c0_i32 : i32, i32
  }
  func.func @transform_1(%arg0: i32) -> (i32, i32) {
    %c0_i32 = arith.constant 0 : i32
    %c0_i32_0 = arith.constant 0 : i32
    return %arg0, %c0_i32 : i32, i32
  }
  func.func @transform_2(%arg0: i32) -> (i32, i32, i32) {
    %c0_i32 = arith.constant 0 : i32
    %c0_i32_0 = arith.constant 0 : i32
    %c0_i32_1 = arith.constant 0 : i32
    return %arg0, %c0_i32, %c0_i32_0 : i32, i32, i32
  }
  func.func @transform_3(%arg0: i32) -> (i32, i32) {
    %c0_i32 = arith.constant 0 : i32
    %c0_i32_0 = arith.constant 0 : i32
    return %arg0, %c0_i32 : i32, i32
  }
}

</mosaic_0001>

<bundles_post_ra>
// kernel: tpu_custom_call.1
= control target key start
LH: loop header
LB: loop body
LE: loop exit
PB: predicated region body
PF: predicated region fallthrough
CT: control target
= control target key end

     0   :  { %8 = vsyncpa [#allocation3], 0  ;;  %s7012_s0 = inlined_call_operand.hbm [shape: bf16[512,128], index: 0, kind: input, shape index: {}]   ;;  %s7013_s1 = inlined_call_operand.hbm [shape: bf16[512,128], index: 1, kind: input, shape index: {}]   ;;  %s7014_s2 = inlined_call_operand.hbm [shape: bf16[512,8,128], index: 2, kind: input, shape index: {}]   ;;  %s7015_s3 = inlined_call_operand.vmem [shape: f32[512,8], index: 3, kind: output, shape index: {}]  }
   0x1   :  { %10 = vsyncpa [#allocation3 + $0x1], 0 }
   0x2   :  { %11 = vsyncpa [#allocation5], 0 }
   0x3   :  { %13 = vsyncpa [#allocation5 + $0x1], 0  ;;  %s5383_s12 = smov 0   ;;  %s5385_s13 = smov 0  }
   0x4   :  { %s5387_s14 = smov 0   ;;  %s5389_s15 = smov 0  }
   0x5 LB: > { %s5402_s16 = sadd.s32 4294967295, %s5355_s15   ;;  %s5405_s17 = sadd.s32 1, %s5355_s15   ;;  %s5355_s15 = sphi %s5389_s15, %s7041_s15   ;;  %s5351_s14 = sphi %s5387_s14, %s7040_s14   ;;  %s5347_s13 = sphi %s5385_s13, %s7039_s13   ;;  %s5343_s12 = sphi %s5383_s12, %s7038_s12  }
   0x6   : > { %s23_s18 = ssub.s32 %s5355_s15, %s5405_s17  ;;  %s26_s19 = sadd.s32 1, %s5351_s14 }
   0x7   : > { %p24_p0 = scmp.eq.s32.totalorder %s23_s18, 0  ;;  %p33_p1 = scmp.ne.s32.totalorder %s5351_s14, %s5347_s13 }
   0x8   : > { %p34_p2 = scmp.eq.s32.totalorder %s5355_s15, 0  ;;  %p39_p3 = scmp.ne.s32.totalorder %s5347_s13, %s5343_s12 }
   0x9   : > { %s5415_s20 = scalar_select %p24_p0, %s5351_s14, %s26_s19  }
   0xa   : > { %p35_p4 = por %p34_p2, %p33_p1  ;;  %p40_p5 = scmp.eq.s32.totalorder %s5402_s16, 0 }
   0xb   : > { %p4685_p6 = scmp.lt.s32.totalorder %s5355_s15, 4  ;;  %s5424_s22 = sand.u32 1, %s5351_s14  }
   0xc   : > { %p5419_p7 = por %p40_p5, %p39_p3  ;;  %s4124_s23 = sshll.u32 %s5424_s22, 6 }
   0xd   : > { %s4269_s24 = sshll.u32 %s5355_s15, 10  ;;  %p5428_p8 = pnand %p4685_p6, %p35_p4 }
   0xe   : > { %s7017_s21 = scalar_select %p5419_p7, 1, 0 }
   0xf   : > { %s162_s26 = sand.u32 1, %s5355_s15   ;;  %s5438_s29 = scalar_lea.hbm %s7013_s1, %s4269_s24 }
  0x10   : > { %s166_s30 = scalar_lea.vmem [#allocation4], %s4124_s23  ;;  %s5446_s5 = scalar_lea.sflag [#allocation5], %s162_s26 }
  0x11   : > { %s173_s4 = sshll.u32 %s166_s30, 4  ;;  %s5233_s6 = scalar_lea.hbm %s5438_s29, 1024  ;;  %s5443_s4 = int_to_ptr.vmem [resolvable:$true] %s173_s4 }
  0x12   : > { %p5234_p11 = scmp.ne.s32.totalorder %s5438_s29, %s5233_s6  ;;  %p5452_p12 = pneg %p5428_p8 }
  0x13   : > { %s5238_s10 = scalar_lea.hbm %s7013_s1, 4096  ;;  %p5239_p1 = scmp.lt.s32.totalorder %s5438_s29, %s7013_s1 }
  0x14   : > { %p5236_p13 = pnand %p5452_p12, %p5234_p11  ;;  %p5240_p2 = scmp.lt.s32.totalorder %s5238_s10, %s5233_s6 }
  0x16   : > { %p5237_p0 = pneg %p5236_p13  ;;  %p5241_p3 = por %p5240_p2, %p5239_p1 }
  0x18   : > { %p5242_p4 = pnand %p5241_p3, %p5237_p0 }
  0x1a   : > { %5245 = shalt.err (!%p5242_p4)
}
  0x1b   : > { %s5246_s18 = scalar_lea.vmem %s5443_s4, 1024  ;;  %s5357_s19 = smov [#allocation4]  }
  0x1c   : > { %p5247_p5 = scmp.ne.s32.totalorder %s5443_s4, %s5246_s18  ;;  %s5251_s26 = sshll.u32 %s5357_s19, 4  ;;  %s5252_s26 = int_to_ptr.vmem [resolvable:$false] %s5251_s26 }
  0x1d   : > { %s5253_s27 = scalar_lea.vmem %s5252_s26, 2048  ;;  %p5254_p13 = scmp.lt.s32.totalorder %s5443_s4, %s5252_s26 }
  0x1e   : > { %p5249_p6 = pnand %p5247_p5, %p5452_p12  ;;  %p5255_p9 = scmp.lt.s32.totalorder %s5253_s27, %s5246_s18 }
  0x20   : > { %p5250_p11 = pneg %p5249_p6  ;;  %p5256_p10 = por %p5255_p9, %p5254_p13 }
  0x22   : > { %p5257_p7 = pnand %p5256_p10, %p5250_p11 }
  0x24   : > { %5260 = shalt.err (!%p5257_p7)
}
  0x25   : > { %s5358_s28 = smov 64   ;;  %s5359_s30 = smov 4  }
  0x26   : > { %4681 = dma.hbm_to_vmem [thread:$0]  (!%p5428_p8), %s5438_s29, 1024, %s5443_s4, %s5446_s5, %s5358_s28, %s5358_s28, %s5359_s30  }
  0x27   : > { %p7020_p9 = scmp.lt.s32.totalorder %s5355_s15, 5  ;;  %p7021_p7 = scmp.ge.s32.totalorder %s5355_s15, 1 }
  0x28   : > { %s5491_s10 = scalar_lea.hbm %s7012_s0, %s4269_s24  ;;  %s145_s11 = scalar_lea.vmem [#allocation2], %s4124_s23 }
  0x29   : > { %p5482_p10 = pnand %p7021_p7, %p7020_p9  ;;  %s152_s12 = sshll.u32 %s145_s11, 4  ;;  %s5496_s12 = int_to_ptr.vmem [resolvable:$true] %s152_s12 }
  0x2a   : > { %s4130_s18 = sshll.u32 %s5424_s22, 9  ;;  %s142_s29 = scalar_lea.sflag [#allocation3], %s5424_s22 }
  0x2b   : > { %s7022_s6 = scalar_select %p5482_p10, 1, 0 }
  0x2c   : > { %s5261_s4 = scalar_lea.hbm %s5491_s10, 1024  ;;  %s5266_s24 = scalar_lea.hbm %s7012_s0, 4096 }
  0x2d   : > { %p5262_p0 = scmp.ne.s32.totalorder %s5491_s10, %s5261_s4  ;;  %p5267_p3 = scmp.lt.s32.totalorder %s5491_s10, %s7012_s0 }
  0x2e   : > { %p5268_p4 = scmp.lt.s32.totalorder %s5266_s24, %s5261_s4 }
  0x2f   : > { %p5264_p1 = pnand %p5262_p0, %p5452_p12 }
  0x30   : > { %p5269_p5 = por %p5268_p4, %p5267_p3 }
  0x31   : > { %p5265_p2 = pneg %p5264_p1 }
  0x33   : > { %p5270_p6 = pnand %p5269_p5, %p5265_p2 }
  0x35   : > { %5273 = shalt.err (!%p5270_p6)
}
  0x36   : > { %s5274_s23 = scalar_lea.vmem %s5496_s12, 1024  ;;  %s5360_s9 = smov [#allocation2]  }
  0x37   : > { %p5275_p11 = scmp.ne.s32.totalorder %s5496_s12, %s5274_s23  ;;  %s5279_s11 = sshll.u32 %s5360_s9, 4  ;;  %s5280_s11 = int_to_ptr.vmem [resolvable:$false] %s5279_s11 }
  0x38   : > { %s5281_s19 = scalar_lea.vmem %s5280_s11, 2048  ;;  %p5282_p7 = scmp.lt.s32.totalorder %s5496_s12, %s5280_s11 }
  0x39   : > { %p5277_p13 = pnand %p5275_p11, %p5452_p12  ;;  %p5283_p0 = scmp.lt.s32.totalorder %s5281_s19, %s5274_s23 }
  0x3b   : > { %p5278_p9 = pneg %p5277_p13  ;;  %p5284_p1 = por %p5283_p0, %p5282_p7 }
  0x3d   : > { %p5285_p10 = pnand %p5284_p1, %p5278_p9 }
  0x3f   : > { %5288 = shalt.err (!%p5285_p10)
}
  0x40   : > { %4678 = dma.hbm_to_vmem [thread:$0]  (!%p5428_p8), %s5491_s10, 1024, %s5496_s12, %s142_s29, %s5358_s28, %s5358_s28, %s5359_s30  }
  0x41   : > { %s4271_s4 = sshll.u32 %s5355_s15, 13  ;;  %s187_s26 = scalar_lea.vmem [#allocation6], %s4130_s18 }
  0x42   : > { %s194_s24 = sshll.u32 %s187_s26, 4  ;;  %s5528_s23 = scalar_lea.hbm %s7014_s2, %s4271_s4  ;;  %s195_s24 = int_to_ptr.vmem [resolvable:$true] %s194_s24 }
  0x43   : > { %s5289_s9 = scalar_lea.hbm %s5528_s23, 8192  ;;  %s5294_s15 = scalar_lea.hbm %s7014_s2, 32768 }
  0x44   : > { %p5290_p10 = scmp.ne.s32.totalorder %s5528_s23, %s5289_s9  ;;  %p5295_p4 = scmp.lt.s32.totalorder %s5528_s23, %s7014_s2 }
  0x45   : > { %p5296_p5 = scmp.lt.s32.totalorder %s5294_s15, %s5289_s9 }
  0x46   : > { %p5292_p2 = pnand %p5290_p10, %p5452_p12 }
  0x47   : > { %p5297_p6 = por %p5296_p5, %p5295_p4 }
  0x48   : > { %p5293_p3 = pneg %p5292_p2 }
  0x4a   : > { %p5298_p11 = pnand %p5297_p6, %p5293_p3 }
  0x4c   : > { %5301 = shalt.err (!%p5298_p11)
}
  0x4d   : > { %s5302_s18 = scalar_lea.vmem %s195_s24, 8192  ;;  %s5361_s29 = smov [#allocation6]  }
  0x4e   : > { %p5303_p13 = scmp.ne.s32.totalorder %s195_s24, %s5302_s18  ;;  %s5307_s19 = sshll.u32 %s5361_s29, 4  ;;  %s5308_s19 = int_to_ptr.vmem [resolvable:$false] %s5307_s19 }
  0x4f   : > { %s5309_s4 = scalar_lea.vmem %s5308_s19, 16384  ;;  %p5310_p0 = scmp.lt.s32.totalorder %s195_s24, %s5308_s19 }
  0x50   : > { %p5305_p9 = pnand %p5303_p13, %p5452_p12  ;;  %p5311_p1 = scmp.lt.s32.totalorder %s5309_s4, %s5302_s18 }
  0x52   : > { %p5306_p7 = pneg %p5305_p9  ;;  %p5312_p10 = por %p5311_p1, %p5310_p0 }
  0x54   : > { %p5313_p2 = pnand %p5312_p10, %p5306_p7 }
  0x56   : > { %5316 = shalt.err (!%p5313_p2)
}
  0x57   : > { %4684 = dma.hbm_to_vmem [thread:$0]  (!%p5428_p8), %s5528_s23, 8192, %s195_s24, %s5446_s5, %s5358_s28, %s5358_s28, %s5359_s30  }
  0x58   : > { %p7023_p12 = scmp.ne.s32.totalorder %s7022_s6, 0 }
  0x59   : > { %s5553_s7 = sand.u32 (!%p7023_p12), 1, %s5347_s13   ;;  %p7024_p3 = scmp.ne.s32.totalorder (!%p7023_p12), %s7017_s21, 0 }
  0x5a   : > { %206 = sbr.rel (%p7023_p12) target bundleno = 543 (0x21f), region = 32  ;;  %s4134_s26 = sshll.u32 (!%p7023_p12), %s5553_s7, 6 }
  0x5b   : > { %s209_s27 = scalar_lea.sflag (!%p7023_p12), [#allocation3], %s5553_s7  ;;  %s5557_s8 = scalar_lea.vmem (!%p7023_p12), [#allocation2], %s4134_s26 }
  0x5f   : > { %5334 = dma.done.wait (%p7024_p3), %s209_s27, 1024  }
  0x60   : > { %5336 = vsyncadd (%p7024_p3), %s209_s27, 4294966272  ;;  %s217_s25 = sand.u32 1, %s5402_s16   ;;  %s5564_s28 = scalar_lea.vmem [#allocation4], %s4134_s26 }
  0x61   : > { %s218_s5 = scalar_lea.sflag [#allocation5], %s217_s25 }
  0x62   : > { %5338 = dma.done.wait (%p7024_p3), %s218_s5, 9216  }
  0x63   : > { %5340 = vsyncadd (%p7024_p3), %s218_s5, 4294958080  ;;  %v644_v0 = vlaneseq  ;;  %v5362_v1 = vmov 1966171168   ;;  %s4136_s30 = sshll.u32 %s5553_s7, 9  ;;  %v4273_v7 = vld [vmem:[%s5557_s8] sm:$0xff]   ;;  %v5595_v44 = vld [vmem:[%s5557_s8 + $0x8] sm:$0xff]  }
  0x64   : > { %v642_v2 = vunpack.c.l.s4 %v5362_v1  ;;  %v4305_v8 = vld [vmem:[%s5564_s28] sm:$0xff]   ;;  %v4274_v9 = vunpack.c.l.bf16 %v4273_v7  ;;  %v4275_v11 = vunpack.c.h.bf16 %v4273_v7  ;;  %s5577_s21 = scalar_lea.vmem [#allocation6], %s4136_s30  ;;  %v5598_v45 = vld [vmem:[%s5564_s28 + $0x8] sm:$0xff]   ;;  %v4278_v54 = vunpack.c.l.bf16 %v5595_v44  ;;  %s4137_s6 = sshll.u32 %s5402_s16, 4 }
  0x65   : > { %v645_v3 = vshrl.u32 %v644_v0, 7  ;;  %v3345_v4 = vand.u32 127, %v644_v0  ;;  %v4306_v10 = vunpack.c.l.bf16 %v4305_v8  ;;  %v4307_v12 = vunpack.c.h.bf16 %v4305_v8  ;;  %v4337_v17 = vld [vmem:[%s5577_s21] sm:$0xff]   ;;  %v4606_v21 = vld [vmem:[%s5577_s21 + $0x8] sm:$0xff]   ;;  %v4607_v53 = vld [vmem:[%s5577_s21 + $0x10] sm:$0xff]   ;;  %p6456_p8 = scmp.lt.s32.totalorder %s4137_s6, 63 }
  0x66   : > { %v643_v6 = vunpack.c.0.s8 %v642_v2  ;;  %v4609_v23 = vld [vmem:[%s5577_s21 + $0x20] sm:$0xff]   ;;  %v4338_v25 = vunpack.c.l.bf16 %v4337_v17  ;;  %v4342_v29 = vunpack.c.l.bf16 %v4606_v21  ;;  %v4339_v47 = vunpack.c.h.bf16 %v4337_v17  ;;  %v4610_v1 = vld [vmem:[%s5577_s21 + $0x28] sm:$0xff]  }
  0x67   : > { %v5570_v5 = vsub.s32 %v3345_v4, %v645_v3  ;;  %v336_v13 = vadd.f32 %v4306_v10, %v4274_v9  ;;  %v337_v15 = vadd.f32 %v4307_v12, %v4275_v11  ;;  %v5581_v20 = vsub.s32 0, %v645_v3  ;;  %s7043_s6 = smov (!%p6456_p8, %s4137_s6), 63 }
  0x68   : > { %v5575_v14 = vsub.s32 %v643_v6, %v645_v3  ;;  %v4354_v34 = vunpack.c.l.bf16 %v4609_v23  ;;  %v4355_v37 = vunpack.c.h.bf16 %v4609_v23  ;;  %v4343_v52 = vunpack.c.h.bf16 %v4606_v21  ;;  %s4138_s16 = sshll.u32 %s7043_s6, 3 }
  0x69   : > { %v352_v16 = vmul.f32 0.33333334, %v336_v13  ;;  %v353_v18 = vmul.f32 0.33333334, %v337_v15  ;;  %v4310_v55 = vunpack.c.l.bf16 %v5598_v45  ;;  %v4346_v61 = vunpack.c.l.bf16 %v4607_v53  ;;  %v4611_v13 = vld [vmem:[%s5577_s21 + $0x30] sm:$0xff]   ;;  %s6520_s11 = scalar_lea.vmem %s7015_s3, %s4138_s16 }
  0x6a   : > { %v4347_v0 = vunpack.c.h.bf16 %v4607_v53  ;;  %v4358_v9 = vunpack.c.l.bf16 %v4610_v1  ;;  %v4359_v12 = vunpack.c.h.bf16 %v4610_v1  ;;  %v4362_v21 = vunpack.c.l.bf16 %v4611_v13 }
  0x6b   : > { %v647_v19 = vrot.slane %v352_v16, %v5575_v14  ;;  %v640_v22 = vcombine.high %v352_v16, %v352_v16  ;;  %v696_v24 = vrot.slane %v353_v18, %v5575_v14  ;;  %v689_v39 = vcombine.high %v353_v18, %v353_v18 }
  0x6c   : > { %v338_v2 = vadd.f32 %v4310_v55, %v4278_v54  ;;  %vm3858_vm0 = vcmask 1041409   ;;  %vm3860_vm1 = vcmask 1042434   ;;  %vm3862_vm2 = vcmask 1043459  }
  0x6d   : > { %v663_v26 = vrot.slane %v647_v19, %v5575_v14  ;;  %v655_v27 = vcombine.high %v647_v19, %v647_v19  ;;  %v654_v28 = vrot.slane %v640_v22, %v5575_v14  ;;  %v712_v30 = vrot.slane %v696_v24, %v5575_v14 }
  0x6e   : > { %v704_v31 = vcombine.high %v696_v24, %v696_v24  ;;  %v703_v59 = vrot.slane %v689_v39, %v5575_v14  ;;  %v354_v18 = vmul.f32 0.33333334, %v338_v2  ;;  %v4608_v24 = vld [vmem:[%s5577_s21 + $0x18] sm:$0xff]   ;;  %vm3864_vm3 = vcmask 1044484  }
  0x6f   : > { %v1427_v32 = vrot.slane %v663_v26, %v5581_v20  ;;  %v685_v33 = vcombine.high %v663_v26, %v663_v26  ;;  %v677_v35 = vrot.slane %v655_v27, %v5575_v14  ;;  %v1459_v36 = vrot.slane %v712_v30, %v5581_v20 }
  0x70   : > { %v726_v38 = vrot.slane %v704_v31, %v5575_v14  ;;  %v656_v43 = vcombine.high %v654_v28, %v654_v28  ;;  %v670_v51 = vrot.slane %v654_v28, %v5575_v14  ;;  %v734_v63 = vcombine.high %v712_v30, %v712_v30 }
  0x71   : > { %v2064_v40 = vmul.f32 %v4338_v25, %v1427_v32  ;;  %v1435_v41 = vrot.slane %v685_v33, %v5581_v20  ;;  %v687_v42 = vcombine.high %v677_v35, %v677_v35  ;;  %v2072_v49 = vmul.f32 %v4354_v34, %v1459_v36  ;;  %v4612_v36 = vld [vmem:[%s5577_s21 + $0x38] sm:$0xff]  }
  0x72   : > { %v1463_v46 = vrot.slane %v726_v38, %v5581_v20  ;;  %v1431_v50 = vrot.slane %v677_v35, %v5581_v20  ;;  %v684_v58 = vrot.slane %v656_v43, %v5575_v14  ;;  %v1443_v62 = vrot.slane %v670_v51, %v5581_v20 }
  0x73   : > { %2192 = vadd.xlane.f32.xlu0 %v2064_v40  ;;  %v2066_v48 = vmul.f32 %v4342_v29, %v1435_v41  ;;  %v1439_v57 = vrot.slane %v687_v42, %v5581_v20  ;;  %v736_v6 = vcombine.high %v726_v38, %v726_v38  ;;  %v705_v7 = vcombine.high %v703_v59, %v703_v59 }
  0x74   : > { %v2073_v56 = vmul.f32 %v4355_v37, %v1463_v46  ;;  %v2065_v60 = vmul.f32 %v4339_v47, %v1431_v50  ;;  %v1447_v4 = vrot.slane %v684_v58, %v5581_v20  ;;  %v2068_v8 = vmul.f32 %v4346_v61, %v1443_v62  ;;  %v4613_v50 = vld [vmem:[%s5577_s21 + $0x40] sm:$0xff]  }
  0x75   : > { %2196 = vadd.xlane.f32.xlu1 %v2066_v48  ;;  %v2067_v3 = vmul.f32 %v4343_v52, %v1439_v57  ;;  %v1467_v10 = vrot.slane %v734_v63, %v5581_v20  ;;  %v719_v11 = vrot.slane %v703_v59, %v5575_v14  ;;  %v1471_v16 = vrot.slane %v736_v6, %v5581_v20  ;;  %v4614_v59 = vld [vmem:[%s5577_s21 + $0x48] sm:$0xff]   ;;  %v4615_v6 = vld [vmem:[%s5577_s21 + $0x50] sm:$0xff]  }
  0x76   : > { %v2069_v15 = vmul.f32 %v4347_v0, %v1447_v4  ;;  %v733_v17 = vrot.slane %v705_v7, %v5575_v14  ;;  %v686_v23 = vcombine.high %v670_v51, %v670_v51  ;;  %v688_v25 = vcombine.high %v684_v58, %v684_v58 }
  0x77   : > { %2208 = vadd.xlane.f32.xlu0 %v2072_v49  ;;  %v2074_v19 = vmul.f32 %v4358_v9, %v1467_v10  ;;  %v1475_v22 = vrot.slane %v719_v11, %v5581_v20  ;;  %v2075_v26 = vmul.f32 %v4359_v12, %v1471_v16  ;;  %v4363_v27 = vunpack.c.h.bf16 %v4611_v13  ;;  %v5642_v12 = vld [vmem:[%s5557_s8 + $0x10] sm:$0xff]  }
  0x78   : > { %v1479_v28 = vrot.slane %v733_v17, %v5581_v20  ;;  %v745_v29 = vrot.slane %v354_v18, %v5575_v14  ;;  %v4350_v31 = vunpack.c.l.bf16 %v4608_v24  ;;  %v1451_v32 = vrot.slane %v686_v23, %v5581_v20  ;;  %v5645_v13 = vld [vmem:[%s5564_s28 + $0x10] sm:$0xff]  }
  0x79   : > { %2210 = vadd.xlane.f32.xlu1 %v2073_v56  ;;  %v2076_v30 = vmul.f32 %v4362_v21, %v1475_v22  ;;  %v735_v33 = vcombine.high %v719_v11, %v719_v11  ;;  %v4351_v34 = vunpack.c.h.bf16 %v4608_v24  ;;  %v1455_v35 = vrot.slane %v688_v25, %v5581_v20  ;;  %v4616_v22 = vld [vmem:[%s5577_s21 + $0x58] sm:$0xff]  }
  0x7a   : > { %v737_v37 = vcombine.high %v733_v17, %v733_v17  ;;  %v738_v38 = vcombine.high %v354_v18, %v354_v18  ;;  %v2077_v39 = vmul.f32 %v4363_v27, %v1479_v28  ;;  %v753_v40 = vcombine.high %v745_v29, %v745_v29 }
  0x7b   : > { %2194 = vadd.xlane.f32.xlu0 %v2065_v60  ;;  %v4279_v41 = vunpack.c.h.bf16 %v5595_v44  ;;  %v4311_v42 = vunpack.c.h.bf16 %v5598_v45  ;;  %v2070_v43 = vmul.f32 %v4350_v31, %v1451_v32  ;;  %v4366_v46 = vunpack.c.l.bf16 %v4612_v36 }
  0x7c   : > { %v1483_v47 = vrot.slane %v735_v33, %v5581_v20  ;;  %v761_v48 = vrot.slane %v745_v29, %v5575_v14  ;;  %v4367_v49 = vunpack.c.h.bf16 %v4612_v36  ;;  %v752_v51 = vrot.slane %v738_v38, %v5575_v14 }
  0x7d   : > { %2198 = vadd.xlane.f32.xlu1 %v2067_v3  ;;  %v2071_v52 = vmul.f32 %v4351_v34, %v1455_v35  ;;  %v1487_v53 = vrot.slane %v737_v37, %v5581_v20  ;;  %v775_v44 = vrot.slane %v753_v40, %v5575_v14  ;;  %v339_v54 = vadd.f32 %v4311_v42, %v4279_v41  ;;  %v4617_v34 = vld [vmem:[%s5577_s21 + $0x60] sm:$0xff]  }
  0x7e   : > { %v2078_v45 = vmul.f32 %v4366_v46, %v1483_v47  ;;  %v4370_v55 = vunpack.c.l.bf16 %v4613_v50  ;;  %v1491_v56 = vrot.slane %v761_v48, %v5581_v20  ;;  %v783_v57 = vcombine.high %v761_v48, %v761_v48  ;;  %v4618_v47 = vld [vmem:[%s5577_s21 + $0x68] sm:$0xff]  }
  0x7f   : > { %2200 = vadd.xlane.f32.xlu0 %v2068_v8  ;;  %v4371_v58 = vunpack.c.h.bf16 %v4613_v50  ;;  %v754_v60 = vcombine.high %v752_v51, %v752_v51  ;;  %v2079_v61 = vmul.f32 %v4367_v49, %v1487_v53  ;;  %v1495_v62 = vrot.slane %v775_v44, %v5581_v20 }
  0x80   : > { %v785_v63 = vcombine.high %v775_v44, %v775_v44  ;;  %v355_v0 = vmul.f32 0.33333334, %v339_v54  ;;  %v2080_v1 = vmul.f32 %v4370_v55, %v1491_v56  ;;  %v4374_v2 = vunpack.c.l.bf16 %v4614_v59  ;;  %v4619_v55 = vld [vmem:[%s5577_s21 + $0x70] sm:$0xff]  }
  0x81   : > { %2202 = vadd.xlane.f32.xlu1 %v2069_v15  ;;  %v1499_v3 = vrot.slane %v783_v57, %v5581_v20  ;;  %v768_v4 = vrot.slane %v752_v51, %v5575_v14  ;;  %v782_v7 = vrot.slane %v754_v60, %v5575_v14  ;;  %v2081_v8 = vmul.f32 %v4371_v58, %v1495_v62 }
  0x82   : > { %v4375_v9 = vunpack.c.h.bf16 %v4614_v59  ;;  %v1503_v10 = vrot.slane %v785_v63, %v5581_v20  ;;  %v794_v11 = vrot.slane %v355_v0, %v5575_v14  ;;  %v4378_v16 = vunpack.c.l.bf16 %v4615_v6 }
  0x83   : > { %2212 = vadd.xlane.f32.xlu0 %v2074_v19  ;;  %v2082_v15 = vmul.f32 %v4374_v2, %v1499_v3  ;;  %v1507_v17 = vrot.slane %v768_v4, %v5581_v20  ;;  %v784_v18 = vcombine.high %v768_v4, %v768_v4  ;;  %v4379_v19 = vunpack.c.h.bf16 %v4615_v6  ;;  %v4620_v3 = vld [vmem:[%s5577_s21 + $0x78] sm:$0xff]  }
  0x84   : > { %v1511_v21 = vrot.slane %v782_v7, %v5581_v20  ;;  %v786_v23 = vcombine.high %v782_v7, %v782_v7  ;;  %v787_v24 = vcombine.high %v355_v0, %v355_v0  ;;  %v2083_v25 = vmul.f32 %v4375_v9, %v1503_v10 }
  0x85   : > { %2214 = vadd.xlane.f32.xlu1 %v2075_v26  ;;  %v802_v26 = vcombine.high %v794_v11, %v794_v11  ;;  %v4282_v27 = vunpack.c.l.bf16 %v5642_v12  ;;  %v4314_v28 = vunpack.c.l.bf16 %v5645_v13  ;;  %v2084_v29 = vmul.f32 %v4378_v16, %v1507_v17 }
  0x86   : > { %v1515_v31 = vrot.slane %v784_v18, %v5581_v20  ;;  %v810_v32 = vrot.slane %v794_v11, %v5575_v14  ;;  %v4383_v33 = vunpack.c.h.bf16 %v4616_v22  ;;  %v801_v35 = vrot.slane %v787_v24, %v5575_v14 }
  0x87   : > { %2216 = vadd.xlane.f32.xlu0 %v2076_v30  ;;  %v4382_v30 = vunpack.c.l.bf16 %v4616_v22  ;;  %v2085_v36 = vmul.f32 %v4379_v19, %v1511_v21  ;;  %v1519_v37 = vrot.slane %v786_v23, %v5581_v20  ;;  %v824_v38 = vrot.slane %v802_v26, %v5575_v14  ;;  %v4621_v19 = vld [vmem:[%s5577_s21 + $0x80] sm:$0xff]  }
  0x88   : > { %v4386_v41 = vunpack.c.l.bf16 %v4617_v34  ;;  %v1523_v42 = vrot.slane %v810_v32, %v5581_v20  ;;  %v4387_v46 = vunpack.c.h.bf16 %v4617_v34  ;;  %v803_v48 = vcombine.high %v801_v35, %v801_v35 }
  0x89   : > { %2218 = vadd.xlane.f32.xlu1 %v2077_v39  ;;  %v340_v39 = vadd.f32 %v4314_v28, %v4282_v27  ;;  %v2086_v40 = vmul.f32 %v4382_v30, %v1515_v31  ;;  %v2087_v49 = vmul.f32 %v4383_v33, %v1519_v37  ;;  %v1527_v50 = vrot.slane %v824_v38, %v5581_v20 }
  0x8a   : > { %v834_v51 = vcombine.high %v824_v38, %v824_v38  ;;  %v2088_v53 = vmul.f32 %v4386_v41, %v1523_v42  ;;  %v4390_v44 = vunpack.c.l.bf16 %v4618_v47  ;;  %v831_v56 = vrot.slane %v803_v48, %v5575_v14  ;;  %v4623_v42 = vld [vmem:[%s5577_s21 + $0x90] sm:$0xff]  }
  0x8b   : > { %2204 = vadd.xlane.f32.xlu0 %v2070_v43  ;;  %v832_v43 = vcombine.high %v810_v32, %v810_v32  ;;  %v2089_v57 = vmul.f32 %v4387_v46, %v1527_v50  ;;  %v4391_v58 = vunpack.c.h.bf16 %v4618_v47  ;;  %v4394_v62 = vunpack.c.l.bf16 %v4619_v55 }
  0x8c   : > { %v1535_v59 = vrot.slane %v834_v51, %v5581_v20  ;;  %v1543_v2 = vrot.slane %v831_v56, %v5581_v20  ;;  %v835_v4 = vcombine.high %v831_v56, %v831_v56  ;;  %v4283_v9 = vunpack.c.h.bf16 %v5642_v12 }
  0x8d   : > { %2206 = vadd.xlane.f32.xlu1 %v2071_v52  ;;  %v356_v52 = vmul.f32 0.33333334, %v340_v39  ;;  %v1531_v54 = vrot.slane %v832_v43, %v5581_v20  ;;  %v4315_v10 = vunpack.c.h.bf16 %v5645_v13  ;;  %v4399_v18 = vunpack.c.h.bf16 %v4620_v3 }
  0x8e   : > { %v2091_v7 = vmul.f32 %v4391_v58, %v1535_v59  ;;  %v1551_v23 = vrot.slane %v835_v4, %v5581_v20  ;;  %v4403_v28 = vunpack.c.h.bf16 %v4621_v19  ;;  %v4625_v58 = vld [vmem:[%s5577_s21 + $0xa0] sm:$0xff]   ;;  %vm3866_vm4 = vcmask 1045509  }
  0x8f   : > { %2220 = vadd.xlane.f32.xlu0 %v2078_v45  ;;  %v817_v45 = vrot.slane %v801_v35, %v5575_v14  ;;  %v843_v60 = vrot.slane %v356_v52, %v5575_v14  ;;  %v836_v6 = vcombine.high %v356_v52, %v356_v52  ;;  %v341_v13 = vadd.f32 %v4315_v10, %v4283_v9  ;;  %v5682_v35 = vld [vmem:[%s5557_s8 + $0x18] sm:$0xff]   ;;  %v5707_v10 = vld [vmem:[%s5577_s21 + $0xb0] sm:$0xff]  }
  0x90   : > { %v2095_v31 = vmul.f32 %v4399_v18, %v1551_v23  ;;  %v4286_v46 = vunpack.c.l.bf16 %v5682_v35  ;;  %v4419_v9 = vunpack.c.h.bf16 %v4625_v58  ;;  %vm3868_vm5 = vcmask 1046534  }
  0x91   : > { %2222 = vadd.xlane.f32.xlu1 %v2079_v61  ;;  %v2090_v61 = vmul.f32 %v4390_v44, %v1531_v54  ;;  %v1539_v63 = vrot.slane %v817_v45, %v5581_v20  ;;  %v833_v0 = vcombine.high %v817_v45, %v817_v45  ;;  %v859_v17 = vrot.slane %v843_v60, %v5575_v14  ;;  %v4624_v45 = vld [vmem:[%s5577_s21 + $0x98] sm:$0xff]  }
  0x92   : > { %v850_v21 = vrot.slane %v836_v6, %v5575_v14  ;;  %v357_v34 = vmul.f32 0.33333334, %v341_v13  ;;  %v4410_v44 = vunpack.c.l.bf16 %v4623_v42  ;;  %v5703_v6 = vld [vmem:[%s5577_s21 + $0xa8] sm:$0xff]   ;;  %vm3870_vm6 = vcmask 1047559  }
  0x93   : > { %2224 = vadd.xlane.f32.xlu0 %v2080_v1  ;;  %v4395_v1 = vunpack.c.h.bf16 %v4619_v55  ;;  %v2092_v11 = vmul.f32 %v4394_v62, %v1539_v63  ;;  %v1547_v16 = vrot.slane %v833_v0, %v5581_v20  ;;  %v1555_v26 = vrot.slane %v859_v17, %v5581_v20 }
  0x94   : > { %v881_v27 = vcombine.high %v859_v17, %v859_v17  ;;  %v852_v30 = vcombine.high %v850_v21, %v850_v21  ;;  %v892_v50 = vrot.slane %v357_v34, %v5575_v14  ;;  %v885_v51 = vcombine.high %v357_v34, %v357_v34 }
  0x95   : > { %2226 = vadd.xlane.f32.xlu1 %v2081_v8  ;;  %v851_v8 = vcombine.high %v843_v60, %v843_v60  ;;  %v2093_v22 = vmul.f32 %v4395_v1, %v1543_v2  ;;  %v4411_v55 = vunpack.c.h.bf16 %v4623_v42  ;;  %v4414_v63 = vunpack.c.l.bf16 %v4624_v45 }
  0x96   : > { %v1563_v39 = vrot.slane %v881_v27, %v5581_v20  ;;  %v880_v43 = vrot.slane %v852_v30, %v5575_v14  ;;  %v899_v62 = vrot.slane %v885_v51, %v5575_v14  ;;  %v4415_v2 = vunpack.c.h.bf16 %v4624_v45 }
  0x97   : > { %2228 = vadd.xlane.f32.xlu0 %v2082_v15  ;;  %v4398_v15 = vunpack.c.l.bf16 %v4620_v3  ;;  %v873_v12 = vrot.slane %v851_v8, %v5575_v14  ;;  %v4418_v3 = vunpack.c.l.bf16 %v4625_v58  ;;  %v908_v4 = vrot.slane %v892_v50, %v5575_v14 }
  0x98   : > { %v1575_v56 = vrot.slane %v880_v43, %v5581_v20  ;;  %v4287_v17 = vunpack.c.h.bf16 %v5682_v35  ;;  %v4423_v23 = vunpack.c.h.bf16 %v5703_v6  ;;  %v915_v30 = vrot.slane %v899_v62, %v5575_v14  ;;  %v5729_v35 = vld [vmem:[%s5577_s21 + $0xc8] sm:$0xff]  }
  0x99   : > { %2230 = vadd.xlane.f32.xlu1 %v2083_v25  ;;  %v2094_v24 = vmul.f32 %v4398_v15, %v1547_v16  ;;  %v4402_v25 = vunpack.c.l.bf16 %v4621_v19  ;;  %v1559_v32 = vrot.slane %v873_v12, %v5581_v20  ;;  %v883_v33 = vcombine.high %v873_v12, %v873_v12  ;;  %v5715_v12 = vld [vmem:[%s5577_s21 + $0xb8] sm:$0xff]  }
  0x9a   : > { %v901_v16 = vcombine.high %v899_v62, %v899_v62  ;;  %v1587_v13 = vrot.slane %v908_v4, %v5581_v20  ;;  %v4430_v34 = vunpack.c.l.bf16 %v5715_v12  ;;  %v931_v42 = vcombine.high %v915_v30, %v915_v30 }
  0x9b   : > { %2232 = vadd.xlane.f32.xlu0 %v2084_v29  ;;  %v4622_v29 = vld [vmem:[%s5577_s21 + $0x88] sm:$0xff]   ;;  %v2096_v37 = vmul.f32 %v4402_v25, %v1555_v26  ;;  %v2097_v48 = vmul.f32 %v4403_v28, %v1559_v32  ;;  %v4427_v25 = vunpack.c.h.bf16 %v5707_v10  ;;  %v5721_v26 = vld [vmem:[%s5577_s21 + $0xc0] sm:$0xff]   ;;  %v4438_v51 = vunpack.c.l.bf16 %v5729_v35 }
  0x9c   : > { %v4406_v38 = vunpack.c.l.bf16 %v4622_v29  ;;  %v4407_v41 = vunpack.c.h.bf16 %v4622_v29  ;;  %vm3993_vm7 = vcmask 64512  }
  0x9d   : > { %2234 = vadd.xlane.f32.xlu1 %v2085_v36  ;;  %v5685_v36 = vld [vmem:[%s5564_s28 + $0x18] sm:$0xff]  }
  0x9e   : > { %v4318_v47 = vunpack.c.l.bf16 %v5685_v36  ;;  %v4319_v18 = vunpack.c.h.bf16 %v5685_v36 }
  0x9f   : > { %2236 = vadd.xlane.f32.xlu0 %v2086_v40  ;;  %v866_v40 = vrot.slane %v850_v21, %v5575_v14  ;;  %v4422_v21 = vunpack.c.l.bf16 %v5703_v6  ;;  %v5761_v6 = vld [vmem:[%s5577_s21 + $0xe0] sm:$0xff]  }
  0xa0   : > { %v342_v59 = vadd.f32 %v4318_v47, %v4286_v46  ;;  %v343_v36 = vadd.f32 %v4319_v18, %v4287_v17  ;;  %v5736_v46 = vld [vmem:[%s5577_s21 + $0xd0] sm:$0xff]  }
  0xa1   : > { %2238 = vadd.xlane.f32.xlu1 %v2087_v49  ;;  %v1567_v49 = vrot.slane %v883_v33, %v5581_v20  ;;  %v882_v52 = vcombine.high %v866_v40, %v866_v40  ;;  %v1571_v54 = vrot.slane %v866_v40, %v5581_v20  ;;  %v929_v33 = vrot.slane %v901_v16, %v5575_v14 }
  0xa2   : > { %v4435_v40 = vunpack.c.h.bf16 %v5721_v26  ;;  %v359_v45 = vmul.f32 0.33333334, %v343_v36  ;;  %v4443_v58 = vunpack.c.h.bf16 %v5736_v46 }
  0xa3   : > { %2240 = vadd.xlane.f32.xlu0 %v2088_v53  ;;  %v2098_v53 = vmul.f32 %v4406_v38, %v1563_v39  ;;  %v2099_v60 = vmul.f32 %v4407_v41, %v1567_v49  ;;  %v1579_v0 = vrot.slane %v882_v52, %v5581_v20  ;;  %v2100_v1 = vmul.f32 %v4410_v44, %v1571_v54  ;;  %v5743_v52 = vld [vmem:[%s5577_s21 + $0xd8] sm:$0xff]  }
  0xa4   : > { %v4431_v38 = vunpack.c.h.bf16 %v5715_v12  ;;  %v4434_v39 = vunpack.c.l.bf16 %v5721_v26  ;;  %v2104_v41 = vmul.f32 %v4418_v3, %v1587_v13  ;;  %v1603_v49 = vrot.slane %v915_v30, %v5581_v20 }
  0xa5   : > { %2242 = vadd.xlane.f32.xlu1 %v2089_v57  ;;  %v884_v57 = vcombine.high %v880_v43, %v880_v43  ;;  %v2102_v19 = vmul.f32 %v4414_v63, %v1579_v0  ;;  %v933_v43 = vcombine.high %v929_v33, %v929_v33  ;;  %v1607_v44 = vrot.slane %v929_v33, %v5581_v20  ;;  %v5754_v63 = vld [vmem:[%s5557_s8 + $0x20] sm:$0xff]  }
  0xa6   : > { %v4439_v54 = vunpack.c.h.bf16 %v5729_v35  ;;  %v4446_v62 = vunpack.c.l.bf16 %v5743_v52  ;;  %v5757_v0 = vld [vmem:[%s5564_s28 + $0x20] sm:$0xff]   ;;  %v983_v16 = vcombine.high %v359_v45, %v359_v45  ;;  %v4290_v17 = vunpack.c.l.bf16 %v5754_v63 }
  0xa7   : > { %2244 = vadd.xlane.f32.xlu0 %v2090_v61  ;;  %v900_v61 = vcombine.high %v892_v50, %v892_v50  ;;  %v1583_v8 = vrot.slane %v884_v57, %v5581_v20  ;;  %v4442_v57 = vunpack.c.l.bf16 %v5736_v46  ;;  %v4322_v18 = vunpack.c.l.bf16 %v5757_v0 }
  0xa9   : > { %2246 = vadd.xlane.f32.xlu1 %v2091_v7  ;;  %v2101_v7 = vmul.f32 %v4411_v55, %v1575_v56  ;;  %v922_v15 = vrot.slane %v900_v61, %v5575_v14  ;;  %v2103_v28 = vmul.f32 %v4415_v2, %v1583_v8  ;;  %v344_v35 = vadd.f32 %v4322_v18, %v4290_v17 }
  0xab   : > { %2248 = vadd.xlane.f32.xlu0 %v2092_v11  ;;  %v358_v11 = vmul.f32 0.33333334, %v342_v59  ;;  %v932_v29 = vcombine.high %v922_v15, %v922_v15  ;;  %v1591_v32 = vrot.slane %v922_v15, %v5581_v20  ;;  %v1611_v59 = vrot.slane %v931_v42, %v5581_v20  ;;  %v5767_v15 = vld [vmem:[%s5577_s21 + $0xe8] sm:$0xff]  }
  0xac   : > { %v360_v26 = vmul.f32 0.33333334, %v344_v35 }
  0xad   : > { %2250 = vadd.xlane.f32.xlu1 %v2093_v22  ;;  %v930_v22 = vcombine.high %v908_v4, %v908_v4  ;;  %v934_v27 = vcombine.high %v358_v11, %v358_v11 }
  0xaf   : > { %2252 = vadd.xlane.f32.xlu0 %v2094_v24  ;;  %v4426_v24 = vunpack.c.l.bf16 %v5707_v10  ;;  %v948_v47 = vrot.slane %v934_v27, %v5575_v14  ;;  %v990_v10 = vrot.slane %v359_v45, %v5575_v14  ;;  %v5777_v27 = vld [vmem:[%s5577_s21 + $0xf0] sm:$0xff]  }
  0xb1   : > { %2254 = vadd.xlane.f32.xlu1 %v2095_v31  ;;  %v941_v31 = vrot.slane %v358_v11, %v5575_v14  ;;  %v950_v61 = vcombine.high %v948_v47, %v948_v47  ;;  %v2108_v2 = vmul.f32 %v4426_v24, %v1603_v49  ;;  %v964_v8 = vrot.slane %v948_v47, %v5575_v14 }
  0xb2   : > { %v998_v30 = vcombine.high %v990_v10, %v990_v10 }
  0xb3   : > { %2256 = vadd.xlane.f32.xlu0 %v2096_v37  ;;  %v1595_v37 = vrot.slane %v930_v22, %v5581_v20  ;;  %v949_v50 = vcombine.high %v941_v31, %v941_v31  ;;  %v957_v56 = vrot.slane %v941_v31, %v5575_v14  ;;  %v978_v22 = vrot.slane %v950_v61, %v5575_v14 }
  0xb4   : > { %v4454_v31 = vunpack.c.l.bf16 %v5767_v15  ;;  %v1635_v33 = vrot.slane %v964_v8, %v5581_v20  ;;  %v4323_v61 = vunpack.c.h.bf16 %v5757_v0  ;;  %v4596_v0 = vld [vmem:[%s5557_s8 + $0x28] sm:$0xff]  }
  0xb5   : > { %2258 = vadd.xlane.f32.xlu1 %v2097_v48  ;;  %v1599_v48 = vrot.slane %v932_v29, %v5581_v20  ;;  %v2106_v55 = vmul.f32 %v4422_v21, %v1595_v37  ;;  %v971_v3 = vrot.slane %v949_v50, %v5575_v14  ;;  %v979_v4 = vcombine.high %v957_v56, %v957_v56 }
  0xb6   : > { %v1619_v12 = vrot.slane %v957_v56, %v5581_v20  ;;  %v4451_v29 = vunpack.c.h.bf16 %v5761_v6  ;;  %v1639_v36 = vrot.slane %v978_v22, %v5581_v20  ;;  %v1006_v37 = vrot.slane %v990_v10, %v5575_v14 }
  0xb7   : > { %2260 = vadd.xlane.f32.xlu0 %v2098_v53  ;;  %v2105_v53 = vmul.f32 %v4419_v9, %v1591_v32  ;;  %v4447_v9 = vunpack.c.h.bf16 %v5743_v52  ;;  %v981_v11 = vcombine.high %v971_v3, %v971_v3  ;;  %v1623_v13 = vrot.slane %v971_v3, %v5581_v20 }
  0xb8   : > { %v1627_v24 = vrot.slane %v979_v4, %v5581_v20  ;;  %v2112_v42 = vmul.f32 %v4434_v39, %v1619_v12  ;;  %v1020_v50 = vrot.slane %v998_v30, %v5575_v14  ;;  %v1028_v52 = vcombine.high %v1006_v37, %v1006_v37  ;;  %v5819_v4 = vld [vmem:[%s5577_s21 + $0x108] sm:$0xff]  }
  0xb9   : > { %2262 = vadd.xlane.f32.xlu1 %v2099_v60  ;;  %v1615_v60 = vrot.slane %v933_v43, %v5581_v20  ;;  %v1631_v32 = vrot.slane %v981_v11, %v5581_v20  ;;  %v2113_v43 = vmul.f32 %v4435_v40, %v1623_v13  ;;  %v5799_v45 = vmul.f32 %v4442_v57, %v1635_v33  ;;  %v4604_v33 = vld [vmem:[%s5564_s28 + $0x30] sm:$0xff]  }
  0xba   : > { %v2114_v46 = vmul.f32 %v4438_v51, %v1627_v24  ;;  %v5801_v40 = vmul.f32 %v4443_v58, %v1639_v36  ;;  %v1030_v51 = vcombine.high %v1020_v50, %v1020_v50  ;;  %v4291_v57 = vunpack.c.h.bf16 %v5754_v63 }
  0xbb   : > { %2264 = vadd.xlane.f32.xlu0 %v2100_v1  ;;  %v2107_v1 = vmul.f32 %v4423_v23, %v1599_v48  ;;  %v2111_v21 = vmul.f32 %v4431_v38, %v1615_v60  ;;  %v4450_v23 = vunpack.c.l.bf16 %v5761_v6  ;;  %v4455_v38 = vunpack.c.h.bf16 %v5767_v15  ;;  %v5794_v48 = vld [vmem:[%s5577_s21 + $0xf8] sm:$0xff]  }
  0xbc   : > { %v4462_v56 = vunpack.c.l.bf16 %v5794_v48  ;;  %v4463_v3 = vunpack.c.h.bf16 %v5794_v48  ;;  %v1039_v63 = vrot.slane %v360_v26, %v5575_v14  ;;  %v4470_v17 = vunpack.c.l.bf16 %v5819_v4 }
  0xbd   : > { %2266 = vadd.xlane.f32.xlu1 %v2101_v7  ;;  %v2109_v7 = vmul.f32 %v4427_v25, %v1607_v44  ;;  %v980_v25 = vcombine.high %v964_v8, %v964_v8  ;;  %v2115_v44 = vmul.f32 %v4439_v54, %v1631_v32  ;;  %v1651_v54 = vrot.slane %v1006_v37, %v5581_v20  ;;  %v4603_v8 = vld [vmem:[%s5564_s28 + $0x28] sm:$0xff]   ;;  %v4597_v32 = vld [vmem:[%s5557_s8 + $0x30] sm:$0xff]   ;;  %v5852_v37 = vld [vmem:[%s5577_s21 + $0x118] sm:$0xff]  }
  0xbe   : > { %v4471_v18 = vunpack.c.h.bf16 %v5819_v4  ;;  %v4294_v13 = vunpack.c.l.bf16 %v4596_v0  ;;  %v4326_v24 = vunpack.c.l.bf16 %v4603_v8 }
  0xbf   : > { %2268 = vadd.xlane.f32.xlu0 %v2102_v19  ;;  %v2110_v19 = vmul.f32 %v4430_v34, %v1611_v59  ;;  %v997_v34 = vrot.slane %v983_v16, %v5575_v14  ;;  %v1643_v47 = vrot.slane %v980_v25, %v5581_v20  ;;  %v5806_v59 = vld [vmem:[%s5577_s21 + $0x100] sm:$0xff]   ;;  %v5829_v16 = vmul.f32 %v4450_v23, %v1651_v54 }
  0xc0   : > { %v4466_v6 = vunpack.c.l.bf16 %v5806_v59  ;;  %v4467_v15 = vunpack.c.h.bf16 %v5806_v59  ;;  %v1047_v23 = vcombine.high %v1039_v63, %v1039_v63  ;;  %v4479_v54 = vunpack.c.h.bf16 %v5852_v37 }
  0xc1   : > { %2270 = vadd.xlane.f32.xlu1 %v2103_v28  ;;  %v982_v28 = vcombine.high %v978_v22, %v978_v22  ;;  %v999_v39 = vcombine.high %v997_v34, %v997_v34  ;;  %v5808_v60 = vmul.f32 %v4446_v62, %v1643_v47  ;;  %v4327_v47 = vunpack.c.h.bf16 %v4603_v8 }
  0xc3   : > { %2272 = vadd.xlane.f32.xlu0 %v2104_v41  ;;  %v4458_v41 = vunpack.c.l.bf16 %v5777_v27  ;;  %v1647_v49 = vrot.slane %v982_v28, %v5581_v20  ;;  %v1027_v62 = vrot.slane %v999_v39, %v5575_v14  ;;  %v1069_v39 = vrot.slane %v1047_v23, %v5575_v14 }
  0xc5   : > { %2274 = vadd.xlane.f32.xlu1 %v2105_v53  ;;  %v4459_v53 = vunpack.c.h.bf16 %v5777_v27  ;;  %v5813_v58 = vmul.f32 %v4447_v9, %v1647_v49  ;;  %v1663_v9 = vrot.slane %v1030_v51, %v5581_v20  ;;  %v1671_v25 = vrot.slane %v1027_v62, %v5581_v20  ;;  %v5870_v27 = vld [vmem:[%s5577_s21 + $0x120] sm:$0xff]  }
  0xc6   : > { %v1031_v28 = vcombine.high %v1027_v62, %v1027_v62  ;;  %v4298_v49 = vunpack.c.l.bf16 %v4597_v32  ;;  %v4331_v62 = vunpack.c.h.bf16 %v4604_v33 }
  0xc7   : > { %2276 = vadd.xlane.f32.xlu0 %v2106_v55  ;;  %v1013_v55 = vrot.slane %v997_v34, %v5575_v14  ;;  %v5844_v34 = vmul.f32 %v4455_v38, %v1663_v9  ;;  %v346_v38 = vadd.f32 %v4326_v24, %v4294_v13  ;;  %v4605_v13 = vld [vmem:[%s5564_s28 + $0x38] sm:$0xff]  }
  0xc9   : > { %2278 = vadd.xlane.f32.xlu1 %v2107_v1  ;;  %v1655_v1 = vrot.slane %v1020_v50, %v5581_v20  ;;  %v1667_v10 = vrot.slane %v1013_v55, %v5581_v20  ;;  %v1029_v11 = vcombine.high %v1013_v55, %v1013_v55  ;;  %v5859_v50 = vmul.f32 %v4459_v53, %v1671_v25 }
  0xca   : > { %v4478_v55 = vunpack.c.l.bf16 %v5852_v37  ;;  %v4334_v37 = vunpack.c.l.bf16 %v4605_v13 }
  0xcb   : > { %2280 = vadd.xlane.f32.xlu0 %v2108_v2  ;;  %v1659_v2 = vrot.slane %v1028_v52, %v5581_v20  ;;  %v5836_v22 = vmul.f32 %v4451_v29, %v1655_v1  ;;  %v5846_v35 = vmul.f32 %v4458_v41, %v1667_v10  ;;  %v1675_v29 = vrot.slane %v1029_v11, %v5581_v20 }
  0xcc   : > { %v4330_v41 = vunpack.c.l.bf16 %v4604_v33  ;;  %v1679_v52 = vrot.slane %v1031_v28, %v5581_v20  ;;  %v4482_v10 = vunpack.c.l.bf16 %v5870_v27  ;;  %v4483_v11 = vunpack.c.h.bf16 %v5870_v27 }
  0xcd   : > { %2282 = vadd.xlane.f32.xlu1 %v2109_v7  ;;  %v1032_v7 = vcombine.high %v360_v26, %v360_v26  ;;  %v5838_v12 = vmul.f32 %v4454_v31, %v1659_v2  ;;  %v5864_v51 = vmul.f32 %v4462_v56, %v1675_v29  ;;  %v4299_v2 = vunpack.c.h.bf16 %v4597_v32 }
  0xce   : > { %v348_v56 = vadd.f32 %v4330_v41, %v4298_v49 }
  0xcf   : > { %2284 = vadd.xlane.f32.xlu0 %v2110_v19  ;;  %v5834_v19 = vld [vmem:[%s5577_s21 + $0x110] sm:$0xff]   ;;  %v1046_v30 = vrot.slane %v1032_v7, %v5575_v14 }
  0xd0   : > { %v4474_v31 = vunpack.c.l.bf16 %v5834_v19  ;;  %v4475_v36 = vunpack.c.h.bf16 %v5834_v19  ;;  %v5897_v23 = vmul.f32 0.33333334, %v348_v56  ;;  %v5955_v56 = vld [vmem:[%s5577_s21 + $0x180] sm:$0xff]  }
  0xd1   : > { %2286 = vadd.xlane.f32.xlu1 %v2111_v21  ;;  %v345_v21 = vadd.f32 %v4323_v61, %v4291_v57  ;;  %v1048_v26 = vcombine.high %v1046_v30, %v1046_v30  ;;  %v1079_v57 = vcombine.high %v1069_v39, %v1069_v39  ;;  %v1062_v61 = vrot.slane %v1046_v30, %v5575_v14 }
  0xd2   : > { %v349_v30 = vadd.f32 %v4331_v62, %v4299_v2 }
  0xd3   : > { %2288 = vadd.xlane.f32.xlu0 %v2112_v42  ;;  %v5854_v42 = vmul.f32 0.33333334, %v345_v21  ;;  %v1076_v8 = vrot.slane %v1048_v26, %v5575_v14  ;;  %v4598_v21 = vld [vmem:[%s5557_s8 + $0x38] sm:$0xff]   ;;  %v1699_v48 = vrot.slane %v1062_v61, %v5581_v20  ;;  %v1695_v28 = vrot.slane %v1079_v57, %v5581_v20 }
  0xd4   : > { %v4302_v29 = vunpack.c.l.bf16 %v4598_v21  ;;  %v5933_v41 = vmul.f32 0.33333334, %v349_v30  ;;  %v4303_v26 = vunpack.c.h.bf16 %v4598_v21 }
  0xd5   : > { %2290 = vadd.xlane.f32.xlu1 %v2113_v43  ;;  %v4295_v43 = vunpack.c.h.bf16 %v4596_v0  ;;  %v1088_v53 = vrot.slane %v5854_v42, %v5575_v14  ;;  %v1687_v0 = vrot.slane %v1069_v39, %v5581_v20 }
  0xd6   : > { %v350_v39 = vadd.f32 %v4334_v37, %v4302_v29  ;;  %v6120_v37 = vld [vmem:[%s5577_s21 + $0x1e8] sm:$0xff]  }
  0xd7   : > { %2292 = vadd.xlane.f32.xlu0 %v2114_v46  ;;  %v1055_v46 = vrot.slane %v1039_v63, %v5575_v14  ;;  %v347_v1 = vadd.f32 %v4327_v47, %v4295_v43  ;;  %v5879_v63 = vmul.f32 %v4463_v3, %v1679_v52  ;;  %v1080_v3 = vcombine.high %v1076_v8, %v1076_v8 }
  0xd8   : > { %v1096_v24 = vcombine.high %v1088_v53, %v1088_v53  ;;  %v5905_v33 = vmul.f32 %v4467_v15, %v1687_v0  ;;  %v1703_v43 = vrot.slane %v1076_v8, %v5581_v20 }
  0xd9   : > { %2294 = vadd.xlane.f32.xlu1 %v2115_v44  ;;  %v1077_v44 = vcombine.high %v1055_v46, %v1055_v46  ;;  %v1683_v7 = vrot.slane %v1055_v46, %v5581_v20  ;;  %v5891_v25 = vmul.f32 0.33333334, %v347_v1  ;;  %v5915_v46 = vrot.slane %v1088_v53, %v5575_v14  ;;  %v4649_v1 = vld [vmem:[%s5577_s21 + $0x160] sm:$0xff]  }
  0xda   : > { %v1711_v59 = vrot.slane %v1080_v3, %v5581_v20  ;;  %v5921_v15 = vrot.slane %v1096_v24, %v5575_v14  ;;  %v5940_v4 = vmul.f32 %v4475_v36, %v1703_v43  ;;  %v4514_v8 = vunpack.c.l.bf16 %v4649_v1  ;;  %v5984_v24 = vld [vmem:[%s5577_s21 + $0x1a0] sm:$0xff]  }
  0xdb   : > { %2296 = vadd.xlane.f32.xlu0 %v5799_v45  ;;  %v5875_v45 = vmul.f32 0.33333334, %v346_v38  ;;  %v1691_v9 = vrot.slane %v1077_v44, %v5581_v20  ;;  %v5901_v32 = vmul.f32 %v4466_v6, %v1683_v7  ;;  %v5917_v6 = vmul.f32 %v4474_v31, %v1699_v48  ;;  %v4645_v38 = vld [vmem:[%s5577_s21 + $0x140] sm:$0xff]  }
  0xdc   : > { %v1235_v31 = vrot.slane %v5897_v23, %v5575_v14  ;;  %v4335_v44 = vunpack.c.h.bf16 %v4605_v13  ;;  %v4498_v57 = vunpack.c.l.bf16 %v4645_v38  ;;  %v1719_v27 = vrot.slane %v5921_v15, %v5581_v20 }
  0xdd   : > { %2298 = vadd.xlane.f32.xlu1 %v5801_v40  ;;  %v1078_v40 = vcombine.high %v1062_v61, %v1062_v61  ;;  %v5946_v61 = vmul.f32 %v4479_v54, %v1711_v59  ;;  %v1284_v54 = vrot.slane %v5933_v41, %v5575_v14  ;;  %v4499_v2 = vunpack.c.h.bf16 %v4645_v38 }
  0xde   : > { %v1243_v62 = vcombine.high %v1235_v31, %v1235_v31  ;;  %v5969_v7 = vmul.f32 0.33333334, %v350_v39  ;;  %v351_v0 = vadd.f32 %v4335_v44, %v4303_v26  ;;  %v5975_v21 = vmul.f32 %v4483_v11, %v1719_v27 }
  0xdf   : > { %2300 = vadd.xlane.f32.xlu0 %v5808_v60  ;;  %v1137_v60 = vrot.slane %v5875_v45, %v5575_v14  ;;  %v1707_v47 = vrot.slane %v1078_v40, %v5581_v20  ;;  %v4530_v40 = vunpack.c.l.bf16 %v5955_v56  ;;  %v4531_v3 = vunpack.c.h.bf16 %v5955_v56  ;;  %v6041_v56 = vld [vmem:[%s5577_s21 + $0x148] sm:$0xff]  }
  0xe0   : > { %v5996_v30 = vrot.slane %v1243_v62, %v5575_v14  ;;  %v6000_v29 = vmul.f32 0.33333334, %v351_v0  ;;  %v4547_v59 = vunpack.c.h.bf16 %v5984_v24 }
  0xe1   : > { %2302 = vadd.xlane.f32.xlu1 %v5813_v58  ;;  %v5910_v58 = vmul.f32 %v4470_v17, %v1691_v9  ;;  %v5929_v17 = vmul.f32 %v4471_v18, %v1695_v28  ;;  %v1145_v49 = vcombine.high %v1137_v60, %v1137_v60  ;;  %v5942_v18 = vmul.f32 %v4478_v55, %v1707_v47 }
  0xe2   : > { %v5951_v53 = vrot.slane %v1137_v60, %v5575_v14  ;;  %v5965_v55 = vrot.slane %v1235_v31, %v5575_v14  ;;  %v4515_v9 = vunpack.c.h.bf16 %v4649_v1  ;;  %v1292_v28 = vcombine.high %v1284_v54, %v1284_v54  ;;  %v6019_v31 = vld [vmem:[%s5577_s21 + $0x1c0] sm:$0xff]  }
  0xe3   : > { %2304 = vadd.xlane.f32.xlu0 %v5829_v16  ;;  %v1186_v16 = vrot.slane %v5891_v25, %v5575_v14  ;;  %v5959_v19 = vrot.slane %v1145_v49, %v5575_v14  ;;  %v4546_v47 = vunpack.c.l.bf16 %v5984_v24  ;;  %v6016_v49 = vrot.slane %v1284_v54, %v5575_v14  ;;  %v6044_v54 = vld [vmem:[%s5577_s21 + $0x168] sm:$0xff]  }
  0xe4   : > { %v1747_v13 = vrot.slane %v5951_v53, %v5581_v20  ;;  %v1811_v11 = vrot.slane %v5965_v55, %v5581_v20  ;;  %v1382_v1 = vrot.slane %v6000_v29, %v5575_v14  ;;  %v1175_v62 = vcombine.high %v5951_v53, %v5951_v53  ;;  %v6063_v24 = vld [vmem:[%s5577_s21 + $0x188] sm:$0xff]  }
  0xe5   : > { %2306 = vadd.xlane.f32.xlu1 %v5836_v22  ;;  %v1715_v22 = vrot.slane %v5915_v46, %v5581_v20  ;;  %v5962_v36 = vrot.slane %v1186_v16, %v5575_v14 }
  0xe6   : > { %v6009_v38 = vmul.f32 %v4498_v57, %v1747_v13  ;;  %v6026_v44 = vmul.f32 %v4530_v40, %v1811_v11  ;;  %v1815_v57 = vrot.slane %v5996_v30, %v5581_v20  ;;  %v6076_v11 = vrot.slane %v1382_v1, %v5575_v14 }
  0xe7   : > { %2308 = vadd.xlane.f32.xlu0 %v5838_v12  ;;  %v1194_v12 = vcombine.high %v1186_v16, %v1186_v16  ;;  %v1224_v0 = vcombine.high %v5962_v36, %v5962_v36 }
  0xe9   : > { %2310 = vadd.xlane.f32.xlu1 %v5844_v34  ;;  %v5972_v34 = vmul.f32 %v4482_v10, %v1715_v22  ;;  %v5980_v48 = vrot.slane %v1194_v12, %v5575_v14  ;;  %v1779_v10 = vrot.slane %v5962_v36, %v5581_v20  ;;  %v6029_v22 = vrot.slane %v1292_v28, %v5575_v14  ;;  %v6036_v12 = vld [vmem:[%s5577_s21 + $0x128] sm:$0xff]  }
  0xea   : > { %v4486_v36 = vunpack.c.l.bf16 %v6036_v12  ;;  %v1390_v28 = vcombine.high %v1382_v1, %v1382_v1 }
  0xeb   : > { %2312 = vadd.xlane.f32.xlu0 %v5846_v35  ;;  %v1751_v35 = vrot.slane %v5959_v19, %v5581_v20  ;;  %v1783_v16 = vrot.slane %v5980_v48, %v5581_v20  ;;  %v6024_v26 = vmul.f32 %v4514_v8, %v1779_v10  ;;  %v1273_v8 = vcombine.high %v5965_v55, %v5965_v55  ;;  %v4665_v10 = vld [vmem:[%s5577_s21 + $0x1e0] sm:$0xff]  }
  0xec   : > { %v1847_v53 = vrot.slane %v6029_v22, %v5581_v20  ;;  %v4502_v55 = vunpack.c.l.bf16 %v6041_v56 }
  0xed   : > { %2314 = vadd.xlane.f32.xlu1 %v5859_v50  ;;  %v1333_v50 = vrot.slane %v5969_v7, %v5575_v14  ;;  %v6022_v39 = vmul.f32 %v4499_v2, %v1751_v35  ;;  %v4562_v2 = vunpack.c.l.bf16 %v6019_v31  ;;  %v6054_v40 = vmul.f32 %v4515_v9, %v1783_v16 }
  0xee   : > { %v4518_v9 = vunpack.c.l.bf16 %v6044_v54  ;;  %v1787_v16 = vrot.slane %v1224_v0, %v5581_v20  ;;  %v4578_v0 = vunpack.c.l.bf16 %v4665_v10 }
  0xef   : > { %2316 = vadd.xlane.f32.xlu0 %v5864_v51  ;;  %v1341_v27 = vcombine.high %v1333_v50, %v1333_v50  ;;  %v6059_v13 = vrot.slane %v1333_v50, %v5575_v14  ;;  %v1755_v50 = vrot.slane %v1175_v62, %v5581_v20  ;;  %v6084_v51 = vmul.f32 %v4531_v3, %v1815_v57  ;;  %v6098_v3 = vld [vmem:[%s5577_s21 + $0x1a8] sm:$0xff]  }
  0xf0   : > { %v4550_v52 = vunpack.c.l.bf16 %v6098_v3 }
  0xf1   : > { %2318 = vadd.xlane.f32.xlu1 %v5879_v63  ;;  %v1126_v63 = vcombine.high %v5915_v46, %v5915_v46  ;;  %v1843_v46 = vrot.slane %v6016_v49, %v5581_v20  ;;  %v6072_v35 = vrot.slane %v1341_v27, %v5575_v14  ;;  %v1819_v27 = vrot.slane %v1273_v8, %v5581_v20 }
  0xf2   : > { %v1875_v1 = vrot.slane %v6059_v13, %v5581_v20  ;;  %v4579_v8 = vunpack.c.h.bf16 %v4665_v10  ;;  %v6115_v10 = vmul.f32 %v4518_v9, %v1787_v16 }
  0xf3   : > { %2320 = vadd.xlane.f32.xlu0 %v5901_v32  ;;  %v4563_v32 = vunpack.c.h.bf16 %v6019_v31  ;;  %v4534_v31 = vunpack.c.l.bf16 %v6063_v24  ;;  %v6086_v43 = vmul.f32 %v4546_v47, %v1843_v46  ;;  %v1879_v47 = vrot.slane %v6072_v35, %v5581_v20 }
  0xf4   : > { %v6122_v60 = vmul.f32 %v4562_v2, %v1875_v1  ;;  %v1420_v1 = vcombine.high %v6076_v11, %v6076_v11 }
  0xf5   : > { %2322 = vadd.xlane.f32.xlu1 %v5905_v33  ;;  %v1723_v33 = vrot.slane %v1126_v63, %v5581_v20  ;;  %v1322_v63 = vcombine.high %v6016_v49, %v6016_v49  ;;  %v1907_v49 = vrot.slane %v6076_v11, %v5581_v20  ;;  %v6117_v62 = vmul.f32 %v4534_v31, %v1819_v27 }
  0xf6   : > { %v6133_v2 = vmul.f32 %v4563_v32, %v1879_v47  ;;  %v4582_v31 = vunpack.c.l.bf16 %v6120_v37  ;;  %v1177_v32 = vcombine.high %v5959_v19, %v5959_v19  ;;  %v4583_v11 = vunpack.c.h.bf16 %v6120_v37 }
  0xf7   : > { %2324 = vadd.xlane.f32.xlu0 %v5910_v58  ;;  %v6093_v58 = vmul.f32 %v4547_v59, %v1847_v53  ;;  %v6108_v59 = vld [vmem:[%s5577_s21 + $0x1c8] sm:$0xff]   ;;  %v6111_v46 = vmul.f32 %v4486_v36, %v1723_v33  ;;  %v6113_v53 = vmul.f32 %v4502_v55, %v1755_v50  ;;  %v1371_v33 = vcombine.high %v6059_v13, %v6059_v13 }
  0xf8   : > { %v4566_v55 = vunpack.c.l.bf16 %v6108_v59  ;;  %v4567_v9 = vunpack.c.h.bf16 %v6108_v59  ;;  %v6135_v16 = vmul.f32 %v4578_v0, %v1907_v49  ;;  %v1128_v13 = vcombine.high %v5921_v15, %v5921_v15 }
  0xf9   : > { %2326 = vadd.xlane.f32.xlu1 %v5929_v17  ;;  %v1412_v17 = vrot.slane %v1390_v28, %v5575_v14  ;;  %v1373_v28 = vcombine.high %v6072_v35, %v6072_v35  ;;  %v1226_v0 = vcombine.high %v5980_v48, %v5980_v48  ;;  %v4503_v15 = vunpack.c.h.bf16 %v6041_v56 }
  0xfa   : > { %v1275_v19 = vcombine.high %v5996_v30, %v5996_v30  ;;  %v1324_v56 = vcombine.high %v6029_v22, %v6029_v22  ;;  %v7025_v22 = vcombine.high %v5854_v42, %v5854_v42 }
  0xfb   : > { %2328 = vadd.xlane.f32.xlu0 %v5917_v6  ;;  %v1851_v6 = vrot.slane %v1322_v63, %v5581_v20  ;;  %v1911_v35 = vrot.slane %v1412_v17, %v5581_v20 }
  0xfc   : > { %v2193_v57 = vpop.xlane.xlu0 %2192  ;;  %v1855_v42 = vrot.slane %v1324_v56, %v5581_v20  ;;  %v7028_v56 = vcombine.high %v5897_v23, %v5897_v23 }
  0xfd   : > { %v4139_v36 = vmul.f32 -1.442695, %v2193_v57  ;;  %2330 = vadd.xlane.f32.xlu1 %v5940_v4  ;;  %v1422_v4 = vcombine.high %v1412_v17, %v1412_v17  ;;  %v6142_v57 = vmul.f32 %v4550_v52, %v1851_v6  ;;  %v6153_v52 = vmul.f32 %v4579_v8, %v1911_v35 }
  0xfe   : > { %v2197_v50 = vpop.xlane.xlu1 %2196  ;;  %v4487_v17 = vunpack.c.h.bf16 %v6036_v12  ;;  %v4519_v6 = vunpack.c.h.bf16 %v6044_v54  ;;  %v1727_v8 = vrot.slane %v1128_v13, %v5581_v20  ;;  %v1791_v12 = vrot.slane %v1226_v0, %v5581_v20  ;;  %v6195_v0 = vld [vmem:[%s5577_s21 + $0x150] sm:$0xff]  }
  0xff   : > { %4721 = vpow2.f32 %v4139_v36  ;;  %v4141_v27 = vmul.f32 -1.442695, %v2197_v50  ;;  %2332 = vadd.xlane.f32.xlu0 %v5942_v18  ;;  %v1883_v18 = vrot.slane %v1371_v33, %v5581_v20  ;;  %v1759_v36 = vrot.slane %v1177_v32, %v5581_v20 }
 0x100   : > { %v2209_v63 = vpop.xlane.xlu0 %2208  ;;  %v4535_v33 = vunpack.c.h.bf16 %v6063_v24  ;;  %v1823_v54 = vrot.slane %v1275_v19, %v5581_v20  ;;  %v1887_v35 = vrot.slane %v1373_v28, %v5581_v20  ;;  %v4551_v28 = vunpack.c.h.bf16 %v6098_v3 }
 0x101   : > { %4723 = vpow2.f32 %v4141_v27  ;;  %v4147_v47 = vmul.f32 -1.442695, %v2209_v63  ;;  %2334 = vadd.xlane.f32.xlu1 %v5946_v61  ;;  %v1915_v61 = vrot.slane %v1420_v1, %v5581_v20  ;;  %v1919_v27 = vrot.slane %v1422_v4, %v5581_v20  ;;  %v6175_v1 = vld [vmem:[%s5577_s21 + $0x130] sm:$0xff]  }
 0x102   : > { %v2211_v49 = vpop.xlane.xlu1 %2210  ;;  %v6181_v63 = vrot.slane %v7025_v22, %v5575_v14  ;;  %v6187_v4 = vmul.f32 %v4487_v17, %v1727_v8  ;;  %v6189_v13 = vmul.f32 %v4503_v15, %v1759_v36  ;;  %v6191_v32 = vmul.f32 %v4519_v6, %v1791_v12 }
 0x103   : > { %4725 = vpow2.f32 %v4147_v47  ;;  %v4148_v48 = vmul.f32 -1.442695, %v2211_v49  ;;  %2336 = vadd.xlane.f32.xlu0 %v5972_v34  ;;  %v6168_v34 = vmul.f32 %v4566_v55, %v1883_v18  ;;  %v6184_v24 = vmul.f32 %v4582_v31, %v1915_v61  ;;  %v6206_v18 = vld [vmem:[%s5577_s21 + $0x170] sm:$0xff]  }
 0x104   : > { %v2195_v37 = vpop.xlane.xlu0 %2194  ;;  %v7026_v3 = vcombine.high %v5875_v45, %v5875_v45  ;;  %v6209_v49 = vld [vmem:[%s5577_s21 + $0x190] sm:$0xff]   ;;  %v6211_v15 = vmul.f32 %v4535_v33, %v1823_v54  ;;  %v6215_v19 = vmul.f32 %v4567_v9, %v1887_v35  ;;  %v4506_v61 = vunpack.c.l.bf16 %v6195_v0 }
 0x105   : > { %4727 = vpow2.f32 %v4148_v48  ;;  %v4140_v30 = vmul.f32 -1.442695, %v2195_v37  ;;  %2338 = vadd.xlane.f32.xlu1 %v5975_v21  ;;  %v6221_v48 = vrot.slane %v6181_v63, %v5575_v14  ;;  %v7027_v6 = vcombine.high %v5891_v25, %v5891_v25  ;;  %v6232_v9 = vld [vmem:[%s5577_s21 + $0x1b0] sm:$0xff]  }
 0x106   : > { %v2199_v50 = vpop.xlane.xlu1 %2198  ;;  %v6203_v31 = vrot.slane %v7026_v3, %v5575_v14  ;;  %v6237_v36 = vmul.f32 %v4551_v28, %v1855_v42  ;;  %v4522_v12 = vunpack.c.l.bf16 %v6206_v18  ;;  %v6253_v54 = vld [vmem:[%s5577_s21 + $0x1f0] sm:$0xff]   ;;  %v4554_v23 = vunpack.c.l.bf16 %v6232_v9 }
 0x107   : > { %4729 = vpow2.f32 %v4140_v30  ;;  %v4142_v21 = vmul.f32 -1.442695, %v2199_v50  ;;  %2352 = vadd.xlane.f32.xlu0 %v6009_v38  ;;  %v4490_v38 = vunpack.c.l.bf16 %v6175_v1  ;;  %v6229_v59 = vrot.slane %v7027_v6, %v5575_v14 }
 0x108   : > { %v2201_v55 = vpop.xlane.xlu0 %2200  ;;  %v6245_v30 = vrot.slane %v7028_v56, %v5575_v14  ;;  %v6250_v50 = vrot.slane %v6203_v31, %v5575_v14  ;;  %v1731_v22 = vrot.slane %v6221_v48, %v5581_v20 }
 0x109   : > { %4731 = vpow2.f32 %v4142_v21  ;;  %v4143_v47 = vmul.f32 -1.442695, %v2201_v55  ;;  %2354 = vadd.xlane.f32.xlu1 %v6022_v39  ;;  %v6217_v39 = vmul.f32 %v4583_v11, %v1919_v27  ;;  %v6235_v11 = vld [vmem:[%s5577_s21 + $0x1d0] sm:$0xff]   ;;  %v7029_v21 = vcombine.high %v5933_v41, %v5933_v41 }
 0x10a   : > { %v2203_v17 = vpop.xlane.xlu1 %2202  ;;  %v7030_v41 = vcombine.high %v5969_v7, %v5969_v7  ;;  %v1763_v56 = vrot.slane %v6250_v50, %v5581_v20 }
 0x10b   : > { %4733 = vpow2.f32 %v4143_v47  ;;  %v4144_v45 = vmul.f32 -1.442695, %v2203_v17  ;;  %2368 = vadd.xlane.f32.xlu0 %v6024_v26  ;;  %v4538_v26 = vunpack.c.l.bf16 %v6209_v49  ;;  %v6262_v28 = vrot.slane %v7029_v21, %v5575_v14 }
 0x10c   : > { %v4722_v37 = vpop.eup %4721  ;;  %v2213_v8 = vpop.xlane.xlu0 %2212  ;;  %v6268_v47 = vrot.slane %v6229_v59, %v5575_v14  ;;  %v6278_v6 = vrot.slane %v7030_v41, %v5575_v14 }
 0x10d   : > { %v2832_v25 = vadd.f32 1.0, %v4722_v37  ;;  %4735 = vpow2.f32 %v4144_v45  ;;  %v4149_v33 = vmul.f32 -1.442695, %v2213_v8  ;;  %2370 = vadd.xlane.f32.xlu1 %v6054_v40  ;;  %v4570_v40 = vunpack.c.l.bf16 %v6235_v11 }
 0x10e   : > { %v4724_v35 = vpop.eup %4723  ;;  %v2215_v27 = vpop.xlane.xlu1 %2214  ;;  %v6272_v45 = vrot.slane %v6245_v30, %v5575_v14  ;;  %v4586_v37 = vunpack.c.l.bf16 %v6253_v54  ;;  %v6288_v7 = vrot.slane %v6262_v28, %v5575_v14 }
 0x10f   : > { %4737 = vrcp.f32 %v2832_v25  ;;  %v2834_v55 = vadd.f32 1.0, %v4724_v35  ;;  %v4150_v42 = vmul.f32 -1.442695, %v2215_v27  ;;  %2384 = vadd.xlane.f32.xlu0 %v6026_v44  ;;  %v6284_v35 = vmul.f32 %v4490_v38, %v1731_v22 }
 0x110   : > { %v4726_v3 = vpop.eup %4725  ;;  %4739 = vpow2.f32 %v4149_v33  ;;  %v2217_v17 = vpop.xlane.xlu0 %2216  ;;  %v7031_v27 = vcombine.high %v6000_v29, %v6000_v29  ;;  %v1097_v29 = vcombine.high %v6181_v63, %v6181_v63  ;;  %v4507_v63 = vunpack.c.h.bf16 %v6195_v0 }
 0x111   : > { %4741 = vrcp.f32 %v2834_v55  ;;  %v2840_v44 = vadd.f32 1.0, %v4726_v3  ;;  %v4151_v8 = vmul.f32 -1.442695, %v2217_v17  ;;  %2386 = vadd.xlane.f32.xlu1 %v6084_v51  ;;  %v1827_v3 = vrot.slane %v6272_v45, %v5581_v20 }
 0x112   : > { %v4728_v25 = vpop.eup %4727  ;;  %4743 = vpow2.f32 %v4150_v42  ;;  %v2219_v33 = vpop.xlane.xlu1 %2218  ;;  %v6294_v21 = vrot.slane %v7031_v27, %v5575_v14  ;;  %v1795_v42 = vrot.slane %v6268_v47, %v5581_v20  ;;  %v6303_v17 = vrot.slane %v6278_v6, %v5575_v14 }
 0x113   : > { %4745 = vrcp.f32 %v2840_v44  ;;  %v2841_v51 = vadd.f32 1.0, %v4728_v25  ;;  %v4152_v55 = vmul.f32 -1.442695, %v2219_v33  ;;  %2400 = vadd.xlane.f32.xlu0 %v6086_v43  ;;  %v6307_v43 = vmul.f32 %v4506_v61, %v1763_v56 }
 0x114   : > { %v4730_v38 = vpop.eup %4729  ;;  %4747 = vpow2.f32 %v4151_v8  ;;  %v2205_v22 = vpop.xlane.xlu0 %2204  ;;  %v1859_v33 = vrot.slane %v6288_v7, %v5581_v20  ;;  %v6313_v27 = vrot.slane %v6294_v21, %v5575_v14 }
 0x115   : > { %4749 = vrcp.f32 %v2841_v51  ;;  %v2833_v41 = vadd.f32 1.0, %v4730_v38  ;;  %v4145_v44 = vmul.f32 -1.442695, %v2205_v22  ;;  %2402 = vadd.xlane.f32.xlu1 %v6093_v58  ;;  %v6320_v58 = vmul.f32 %v4522_v12, %v1795_v42 }
 0x116   : > { %v4732_v25 = vpop.eup %4731  ;;  %4751 = vpow2.f32 %v4152_v55  ;;  %v2207_v8 = vpop.xlane.xlu1 %2206  ;;  %v6324_v55 = vmul.f32 %v4538_v26, %v1827_v3  ;;  %v1891_v22 = vrot.slane %v6303_v17, %v5581_v20  ;;  %v6334_v26 = vmul.f32 %v4554_v23, %v1859_v33 }
 0x117   : > { %4753 = vrcp.f32 %v2833_v41  ;;  %v2835_v51 = vadd.f32 1.0, %v4732_v25  ;;  %v4146_v38 = vmul.f32 -1.442695, %v2207_v8  ;;  %2416 = vadd.xlane.f32.xlu0 %v6122_v60  ;;  %v1146_v60 = vcombine.high %v6203_v31, %v6203_v31 }
 0x118   : > { %v4734_v61 = vpop.eup %4733  ;;  %4755 = vpow2.f32 %v4145_v44  ;;  %v2221_v56 = vpop.xlane.xlu0 %2220  ;;  %v1923_v3 = vrot.slane %v6313_v27, %v5581_v20  ;;  %v6339_v44 = vrot.slane %v1097_v29, %v5575_v14  ;;  %v6348_v23 = vmul.f32 %v4570_v40, %v1891_v22 }
 0x119   : > { %4757 = vrcp.f32 %v2835_v51  ;;  %v2836_v41 = vadd.f32 1.0, %v4734_v61  ;;  %v4153_v25 = vmul.f32 -1.442695, %v2221_v56  ;;  %2418 = vadd.xlane.f32.xlu1 %v6133_v2  ;;  %v1195_v2 = vcombine.high %v6229_v59, %v6229_v59 }
 0x11a   : > { %v4736_v12 = vpop.eup %4735  ;;  %4759 = vpow2.f32 %v4146_v38  ;;  %v2223_v42 = vpop.xlane.xlu1 %2222  ;;  %v4523_v33 = vunpack.c.h.bf16 %v6206_v18  ;;  %v1244_v59 = vcombine.high %v6245_v30, %v6245_v30  ;;  %v6362_v22 = vmul.f32 %v4586_v37, %v1923_v3 }
 0x11b   : > { %4761 = vrcp.f32 %v2836_v41  ;;  %v2837_v8 = vadd.f32 1.0, %v4736_v12  ;;  %v4154_v51 = vmul.f32 -1.442695, %v2223_v42  ;;  %2432 = vadd.xlane.f32.xlu0 %v6135_v16  ;;  %v6354_v16 = vrot.slane %v1146_v60, %v5575_v14 }
 0x11c   : > { %v6344_v31 = vpop.eup %4737  ;;  %4763 = vpow2.f32 %v4153_v25  ;;  %v2225_v38 = vpop.xlane.xlu0 %2224  ;;  %v1735_v12 = vrot.slane %v6339_v44, %v5581_v20  ;;  %v6368_v60 = vrot.slane %v1195_v2, %v5575_v14  ;;  %v1293_v30 = vcombine.high %v6262_v28, %v6262_v28 }
 0x11d   : > { %v4740_v61 = vpop.eup %4739  ;;  %4765 = vrcp.f32 %v2837_v8  ;;  %v4155_v56 = vmul.f32 -1.442695, %v2225_v38  ;;  %2434 = vadd.xlane.f32.xlu1 %v6153_v52  ;;  %v6380_v28 = vrot.slane %v1244_v59, %v5575_v14 }
 0x11e   : > { %v6358_v41 = vpop.eup %4741  ;;  %v2842_v25 = vadd.f32 1.0, %v4740_v61  ;;  %4767 = vpow2.f32 %v4154_v51  ;;  %v2227_v40 = vpop.xlane.xlu1 %2226  ;;  %v1799_v59 = vrot.slane %v6368_v60, %v5581_v20 }
 0x11f   : > { %v4744_v42 = vpop.eup %4743  ;;  %4769 = vpow2.f32 %v4155_v56  ;;  %v4156_v52 = vmul.f32 -1.442695, %v2227_v40  ;;  %2340 = vadd.xlane.f32.xlu0 %v6111_v46  ;;  %v1767_v46 = vrot.slane %v6354_v16, %v5581_v20 }
 0x120   : > { %v6372_v8 = vpop.eup %4745  ;;  %4771 = vrcp.f32 %v2842_v25  ;;  %v2843_v51 = vadd.f32 1.0, %v4744_v42  ;;  %v2229_v37 = vpop.xlane.xlu0 %2228  ;;  %v7032_v42 = vunpack.c.h.bf16 %v6175_v1  ;;  %v6418_v0 = vmul.f32 %v4523_v33, %v1799_v59 }
 0x121   : > { %v4748_v61 = vpop.eup %4747  ;;  %4773 = vpow2.f32 %v4156_v52  ;;  %v4157_v56 = vmul.f32 -1.442695, %v2229_v37  ;;  %2356 = vadd.xlane.f32.xlu1 %v6113_v53  ;;  %v1342_v53 = vcombine.high %v6278_v6, %v6278_v6  ;;  %v1391_v6 = vcombine.high %v6294_v21, %v6294_v21 }
 0x122   : > { %v6382_v2 = vpop.eup %4749  ;;  %4775 = vrcp.f32 %v2843_v51  ;;  %v2844_v25 = vadd.f32 1.0, %v4748_v61  ;;  %v2231_v40 = vpop.xlane.xlu1 %2230  ;;  %v6386_v38 = vmul.f32 %v7032_v42, %v1735_v12  ;;  %v6394_v51 = vrot.slane %v1293_v30, %v5575_v14  ;;  %v6400_v42 = vld [vmem:[%s5577_s21 + $0x138] sm:$0xff]  }
 0x123   : > { %v4752_v52 = vpop.eup %4751  ;;  %4777 = vpow2.f32 %v4157_v56  ;;  %v4158_v37 = vmul.f32 -1.442695, %v2231_v40  ;;  %2372 = vadd.xlane.f32.xlu0 %v6115_v10  ;;  %v6405_v30 = vmul.f32 %v4507_v63, %v1767_v46  ;;  %v6413_v29 = vrot.slane %v1342_v53, %v5575_v14 }
 0x124   : > { %v4754_v61 = vpop.eup %4753  ;;  %4779 = vrcp.f32 %v2844_v25  ;;  %v2845_v3 = vadd.f32 1.0, %v4752_v52  ;;  %v2233_v1 = vpop.xlane.xlu0 %2232  ;;  %v1831_v25 = vrot.slane %v6380_v28, %v5581_v20  ;;  %v4494_v63 = vunpack.c.l.bf16 %v6400_v42 }
 0x125   : > { %v4756_v56 = vpop.eup %4755  ;;  %4781 = vpow2.f32 %v4158_v37  ;;  %v4159_v10 = vmul.f32 -1.442695, %v2233_v1  ;;  %2388 = vadd.xlane.f32.xlu1 %v6117_v62  ;;  %v3353_v52 = vrot.slane %v4754_v61, %v5570_v5  ;;  %v1863_v1 = vrot.slane %v6394_v51, %v5581_v20 }
 0x126   : > { %v6409_v40 = vpop.eup %4757  ;;  %4783 = vrcp.f32 %v2845_v3  ;;  %v2838_v21 = vadd.f32 1.0, %v4756_v56  ;;  %v2235_v12 = vpop.xlane.xlu1 %2234  ;;  %v3349_v3 = vrot.slane %v6344_v31, %v5570_v5  ;;  %v6429_v33 = vrot.slane %v1391_v6, %v5575_v14 }
 0x127   : > { %v4760_v37 = vpop.eup %4759  ;;  %4785 = vpow2.f32 %v4159_v10  ;;  %v4160_v62 = vmul.f32 -1.442695, %v2235_v12  ;;  %2404 = vadd.xlane.f32.xlu0 %v6142_v57  ;;  %v1127_v59 = vcombine.high %v6221_v48, %v6221_v48  ;;  %v3357_v14 = vrot.slane %v6358_v41, %v5570_v5 }
 0x128   : > { %v6421_v46 = vpop.eup %4761  ;;  %4787 = vrcp.f32 %v2838_v21  ;;  %v2839_v53 = vadd.f32 1.0, %v4760_v37  ;;  %v2237_v61 = vpop.xlane.xlu0 %2236  ;;  %v3859_v12 = vsel %vm3858_vm0, %v3353_v52, %v3349_v3  ;;  %v7033_v21 = vunpack.c.h.bf16 %v6209_v49  ;;  %v6447_v52 = vld [vmem:[%s5577_s21 + $0x158] sm:$0xff]  }
 0x129   : > { %v4764_v57 = vpop.eup %4763  ;;  %4789 = vpow2.f32 %v4160_v62  ;;  %v4161_v18 = vmul.f32 -1.442695, %v2237_v61  ;;  %2420 = vadd.xlane.f32.xlu1 %v6168_v34  ;;  %v3381_v6 = vrot.slane %v6372_v8, %v5570_v5  ;;  %v3385_v49 = vrot.slane %v6382_v2, %v5570_v5 }
 0x12a   : > { %v6433_v31 = vpop.eup %4765  ;;  %4791 = vrcp.f32 %v2839_v53  ;;  %v2846_v56 = vadd.f32 1.0, %v4764_v57  ;;  %v2239_v10 = vpop.xlane.xlu1 %2238  ;;  %v6439_v37 = vmul.f32 %v7033_v21, %v1831_v25  ;;  %v3361_v25 = vrot.slane %v6409_v40, %v5570_v5 }
 0x12b   : > { %v4768_v34 = vpop.eup %4767  ;;  %4793 = vpow2.f32 %v4161_v18  ;;  %v4162_v62 = vmul.f32 -1.442695, %v2239_v10  ;;  %2436 = vadd.xlane.f32.xlu0 %v6184_v24  ;;  %v3861_v8 = vsel %vm3860_vm1, %v3357_v14, %v3859_v12  ;;  %v4510_v12 = vunpack.c.l.bf16 %v6447_v52 }
 0x12c   : > { %v4770_v3 = vpop.eup %4769  ;;  %4795 = vrcp.f32 %v2846_v56  ;;  %v2847_v41 = vadd.f32 1.0, %v4768_v34  ;;  %v2241_v53 = vpop.xlane.xlu0 %2240  ;;  %v1895_v56 = vrot.slane %v6413_v29, %v5581_v20  ;;  %v3365_v21 = vrot.slane %v6421_v46, %v5570_v5 }
 0x12d   : > { %v4772_v61 = vpop.eup %4771  ;;  %v2848_v24 = vadd.f32 1.0, %v4770_v3  ;;  %4797 = vpow2.f32 %v4162_v62  ;;  %v4163_v57 = vmul.f32 -1.442695, %v2241_v53  ;;  %2342 = vadd.xlane.f32.xlu1 %v6187_v4  ;;  %v3872_v62 = vsel %vm3858_vm0, %v3385_v49, %v3381_v6 }
 0x12e   : > { %v4774_v2 = vpop.eup %4773  ;;  %v3389_v40 = vrot.slane %v4772_v61, %v5570_v5  ;;  %4799 = vrcp.f32 %v2847_v41  ;;  %v2243_v18 = vpop.xlane.xlu1 %2242  ;;  %v3863_v3 = vsel %vm3862_vm2, %v3361_v25, %v3861_v8  ;;  %v1176_v53 = vcombine.high %v6250_v50, %v6250_v50 }
 0x12f   : > { %v4776_v10 = vpop.eup %4775  ;;  %4801 = vrcp.f32 %v2848_v24  ;;  %v2849_v34 = vadd.f32 1.0, %v4774_v2  ;;  %v4164_v4 = vmul.f32 -1.442695, %v2243_v18  ;;  %2358 = vadd.xlane.f32.xlu0 %v6189_v13  ;;  %v3369_v49 = vrot.slane %v6433_v31, %v5570_v5 }
 0x130   : > { %v4778_v14 = vpop.eup %4777  ;;  %4803 = vpow2.f32 %v4163_v57  ;;  %v2245_v41 = vpop.xlane.xlu0 %2244  ;;  %v3393_v46 = vrot.slane %v4776_v10, %v5570_v5  ;;  %v3873_v25 = vsel %vm3860_vm1, %v3389_v40, %v3872_v62  ;;  %v7035_v8 = vunpack.c.h.bf16 %v6232_v9 }
 0x131   : > { %v4780_v61 = vpop.eup %4779  ;;  %4805 = vrcp.f32 %v2849_v34  ;;  %v2850_v13 = vadd.f32 1.0, %v4778_v14  ;;  %v4165_v24 = vmul.f32 -1.442695, %v2245_v41  ;;  %2374 = vadd.xlane.f32.xlu1 %v6191_v32  ;;  %v3865_v18 = vsel %vm3864_vm3, %v3365_v21, %v3863_v3 }
 0x132   : > { %v4782_v6 = vpop.eup %4781  ;;  %4807 = vpow2.f32 %v4164_v4  ;;  %v2247_v50 = vpop.xlane.xlu1 %2246  ;;  %v6488_v57 = vmul.f32 %v7035_v8, %v1863_v1  ;;  %v3397_v40 = vrot.slane %v4780_v61, %v5570_v5  ;;  %v1927_v4 = vrot.slane %v6429_v33, %v5581_v20 }
 0x133   : > { %v4784_v2 = vpop.eup %4783  ;;  %4809 = vrcp.f32 %v2850_v13  ;;  %v2851_v32 = vadd.f32 1.0, %v4782_v6  ;;  %v4166_v10 = vmul.f32 -1.442695, %v2247_v50  ;;  %2390 = vadd.xlane.f32.xlu0 %v6211_v15  ;;  %v6499_v9 = vrot.slane %v1127_v59, %v5581_v20 }
 0x134   : > { %v4786_v31 = vpop.eup %4785  ;;  %4811 = vpow2.f32 %v4165_v24  ;;  %v2249_v34 = vpop.xlane.xlu0 %2248  ;;  %v3874_v21 = vsel %vm3862_vm2, %v3393_v46, %v3873_v25  ;;  %v3867_v3 = vsel %vm3866_vm4, %v3369_v49, %v3865_v18  ;;  %v7036_v48 = vunpack.c.h.bf16 %v6235_v11 }
 0x135   : > { %v4788_v1 = vpop.eup %4787  ;;  %4813 = vrcp.f32 %v2851_v32  ;;  %v2852_v15 = vadd.f32 1.0, %v4786_v31  ;;  %v4167_v14 = vmul.f32 -1.442695, %v2249_v34  ;;  %2406 = vadd.xlane.f32.xlu1 %v6237_v36  ;;  %v3401_v46 = vrot.slane %v4784_v2, %v5570_v5  ;;  %v6513_v36 = vld [vmem:[%s5577_s21 + $0x178] sm:$0xff]  }
 0x136   : > { %v4790_v62 = vpop.eup %4789  ;;  %v3373_v41 = vrot.slane %v4788_v1, %v5570_v5  ;;  %4815 = vpow2.f32 %v4166_v10  ;;  %v2251_v61 = vpop.xlane.xlu1 %2250  ;;  %v6508_v59 = vmul.f32 %v7036_v48, %v1895_v56  ;;  %v3875_v49 = vsel %vm3864_vm3, %v3397_v40, %v3874_v21 }
 0x137   : > { %v4792_v13 = vpop.eup %4791  ;;  %4817 = vrcp.f32 %v2852_v15  ;;  %v2853_v24 = vadd.f32 1.0, %v4790_v62  ;;  %v4168_v6 = vmul.f32 -1.442695, %v2251_v61  ;;  %2422 = vadd.xlane.f32.xlu0 %v6215_v19  ;;  %v1771_v18 = vrot.slane %v1176_v53, %v5581_v20 }
 0x138   : > { %v4794_v25 = vpop.eup %4793  ;;  %v3869_v50 = vsel %vm3868_vm5, %v3373_v41, %v3867_v3  ;;  %v3377_v11 = vrot.slane %v4792_v13, %v5570_v5  ;;  %4819 = vpow2.f32 %v4167_v14  ;;  %v2253_v56 = vpop.xlane.xlu0 %2252  ;;  %v4526_v34 = vunpack.c.l.bf16 %v6513_v36 }
 0x139   : > { %v4796_v8 = vpop.eup %4795  ;;  %4821 = vrcp.f32 %v2853_v24  ;;  %v2854_v19 = vadd.f32 1.0, %v4794_v25  ;;  %v4169_v2 = vmul.f32 -1.442695, %v2253_v56  ;;  %2438 = vadd.xlane.f32.xlu1 %v6217_v39  ;;  %v3876_v21 = vsel %vm3866_vm4, %v3401_v46, %v3875_v49  ;;  %v6543_v24 = vld [vmem:[%s5577_s21 + $0x198] sm:$0xff]  }
 0x13a   : > { %v4798_v32 = vpop.eup %4797  ;;  %v3871_v10 = vsel %vm3870_vm6, %v3377_v11, %v3869_v50  ;;  %v3405_v31 = vrot.slane %v4796_v8, %v5570_v5  ;;  %4823 = vpow2.f32 %v4168_v6  ;;  %v2255_v40 = vpop.xlane.xlu1 %2254  ;;  %v1225_v41 = vcombine.high %v6268_v47, %v6268_v47  ;;  %v6560_v56 = vld [vmem:[%s5577_s21 + $0x1b8] sm:$0xff]  }
 0x13b   : > { %v4800_v1 = vpop.eup %4799  ;;  %3994 = vst.msk [vmem:[%s6520_s11] sm:$0xff] %vm3993_vm7, %v3871_v10  ;;  %4825 = vrcp.f32 %v2854_v19  ;;  %v2855_v15 = vadd.f32 1.0, %v4798_v32  ;;  %v4170_v39 = vmul.f32 -1.442695, %v2255_v40  ;;  %2344 = vadd.xlane.f32.xlu0 %v6284_v35  ;;  %v7037_v35 = vunpack.c.h.bf16 %v6253_v54 }
 0x13c   : > { %v4802_v53 = vpop.eup %4801  ;;  %v3877_v14 = vsel %vm3868_vm5, %v3405_v31, %v3876_v21  ;;  %v3409_v62 = vrot.slane %v4800_v1, %v5570_v5  ;;  %4827 = vpow2.f32 %v4169_v2  ;;  %v2257_v3 = vpop.xlane.xlu0 %2256  ;;  %v6549_v50 = vmul.f32 %v4494_v63, %v6499_v9 }
 0x13d   : > { %v4804_v61 = vpop.eup %4803  ;;  %v3413_v48 = vrot.slane %v4802_v53, %v5570_v5  ;;  %4829 = vrcp.f32 %v2855_v15  ;;  %v4171_v13 = vmul.f32 -1.442695, %v2257_v3  ;;  %2360 = vadd.xlane.f32.xlu1 %v6307_v43  ;;  %v6540_v46 = vmul.f32 %v7037_v35, %v1927_v4 }
 0x13e   : > { %v4806_v6 = vpop.eup %4805  ;;  %v3878_v25 = vsel %vm3870_vm6, %v3409_v62, %v3877_v14  ;;  %v2856_v49 = vadd.f32 1.0, %v4804_v61  ;;  %4831 = vpow2.f32 %v4170_v39  ;;  %v2259_v47 = vpop.xlane.xlu1 %2258  ;;  %v6557_v4 = vmul.f32 %v4510_v12, %v1771_v18  ;;  %v6574_v62 = vld [vmem:[%s5577_s21 + $0x1d8] sm:$0xff]  }
 0x13f   : > { %v4808_v11 = vpop.eup %4807  ;;  %3995 = vst.msk [vmem:[%s6520_s11 + $0x8] sm:$0xff] %vm3993_vm7, %v3878_v25  ;;  %v3417_v54 = vrot.slane %v4806_v6, %v5570_v5  ;;  %4833 = vpow2.f32 %v4171_v13  ;;  %v4172_v43 = vmul.f32 -1.442695, %v2259_v47  ;;  %2376 = vadd.xlane.f32.xlu0 %v6320_v58  ;;  %v1803_v9 = vrot.slane %v1225_v41, %v5581_v20 }
 0x140   : > { %v4810_v8 = vpop.eup %4809  ;;  %4835 = vrcp.f32 %v2856_v49  ;;  %v2857_v19 = vadd.f32 1.0, %v4808_v11  ;;  %v2261_v63 = vpop.xlane.xlu0 %2260  ;;  %v4542_v2 = vunpack.c.l.bf16 %v6543_v24  ;;  %v1274_v1 = vcombine.high %v6272_v45, %v6272_v45 }
 0x141   : > { %v4812_v32 = vpop.eup %4811  ;;  %v3879_v10 = vsel %vm3858_vm0, %v3417_v54, %v3413_v48  ;;  %v3421_v31 = vrot.slane %v4810_v8, %v5570_v5  ;;  %4837 = vpow2.f32 %v4172_v43  ;;  %v4173_v58 = vmul.f32 -1.442695, %v2261_v63  ;;  %2392 = vadd.xlane.f32.xlu1 %v6324_v55  ;;  %v6591_v8 = vld [vmem:[%s5577_s21 + $0x1f8] sm:$0xff]  }
 0x142   : > { %v4814_v12 = vpop.eup %4813  ;;  %4839 = vrcp.f32 %v2857_v19  ;;  %v2858_v18 = vadd.f32 1.0, %v4812_v32  ;;  %v2263_v40 = vpop.xlane.xlu1 %2262  ;;  %v4558_v21 = vunpack.c.l.bf16 %v6560_v56  ;;  %v6578_v45 = vmul.f32 %v4526_v34, %v1803_v9 }
 0x143   : > { %v4816_v15 = vpop.eup %4815  ;;  %v3880_v39 = vsel %vm3860_vm1, %v3421_v31, %v3879_v10  ;;  %v3425_v53 = vrot.slane %v4814_v12, %v5570_v5  ;;  %4841 = vpow2.f32 %v4173_v58  ;;  %v4174_v14 = vmul.f32 -1.442695, %v2263_v40  ;;  %2408 = vadd.xlane.f32.xlu0 %v6334_v26 }
 0x144   : > { %v4818_v55 = vpop.eup %4817  ;;  %4843 = vrcp.f32 %v2858_v18  ;;  %v2859_v3 = vadd.f32 1.0, %v4816_v15  ;;  %v2265_v41 = vpop.xlane.xlu0 %2264  ;;  %v1323_v61 = vcombine.high %v6288_v7, %v6288_v7  ;;  %v1835_v34 = vrot.slane %v1274_v1, %v5581_v20 }
 0x145   : > { %v4820_v48 = vpop.eup %4819  ;;  %v3881_v13 = vsel %vm3862_vm2, %v3425_v53, %v3880_v39  ;;  %v3429_v35 = vrot.slane %v4818_v55, %v5570_v5  ;;  %4845 = vpow2.f32 %v4174_v14  ;;  %v4175_v26 = vmul.f32 -1.442695, %v2265_v41  ;;  %2424 = vadd.xlane.f32.xlu1 %v6348_v23 }
 0x146   : > { %v4822_v6 = vpop.eup %4821  ;;  %4847 = vrcp.f32 %v2859_v3  ;;  %v2860_v25 = vadd.f32 1.0, %v4820_v48  ;;  %v2267_v49 = vpop.xlane.xlu1 %2266  ;;  %v4574_v47 = vunpack.c.l.bf16 %v6574_v62  ;;  %v1867_v9 = vrot.slane %v1323_v61, %v5581_v20 }
 0x147   : > { %v4824_v11 = vpop.eup %4823  ;;  %v3882_v7 = vsel %vm3864_vm3, %v3429_v35, %v3881_v13  ;;  %v3433_v54 = vrot.slane %v4822_v6, %v5570_v5  ;;  %4849 = vpow2.f32 %v4175_v26  ;;  %v4176_v43 = vmul.f32 -1.442695, %v2267_v49  ;;  %2440 = vadd.xlane.f32.xlu0 %v6362_v22 }
 0x148   : > { %v4826_v23 = vpop.eup %4825  ;;  %4851 = vrcp.f32 %v2860_v25  ;;  %v2861_v19 = vadd.f32 1.0, %v4824_v11  ;;  %v2269_v63 = vpop.xlane.xlu0 %2268  ;;  %v1372_v32 = vcombine.high %v6303_v17, %v6303_v17  ;;  %v6599_v1 = vmul.f32 %v4542_v2, %v1835_v34 }
 0x149   : > { %v4828_v10 = vpop.eup %4827  ;;  %v3883_v31 = vsel %vm3866_vm4, %v3433_v54, %v3882_v7  ;;  %v3437_v58 = vrot.slane %v4826_v23, %v5570_v5  ;;  %4853 = vpow2.f32 %v4176_v43  ;;  %v4177_v12 = vmul.f32 -1.442695, %v2269_v63  ;;  %2346 = vadd.xlane.f32.xlu1 %v6386_v38 }
 0x14a   : > { %v4830_v22 = vpop.eup %4829  ;;  %4855 = vrcp.f32 %v2861_v19  ;;  %v2862_v18 = vadd.f32 1.0, %v4828_v10  ;;  %v2271_v40 = vpop.xlane.xlu1 %2270  ;;  %v4590_v15 = vunpack.c.l.bf16 %v6591_v8  ;;  %v1899_v41 = vrot.slane %v1372_v32, %v5581_v20 }
 0x14b   : > { %v4832_v39 = vpop.eup %4831  ;;  %v3884_v17 = vsel %vm3868_vm5, %v3437_v58, %v3883_v31  ;;  %v3441_v53 = vrot.slane %v4830_v22, %v5570_v5  ;;  %4857 = vpow2.f32 %v4177_v12  ;;  %v4178_v14 = vmul.f32 -1.442695, %v2271_v40  ;;  %2362 = vadd.xlane.f32.xlu0 %v6405_v30 }
 0x14c   : > { %v4834_v55 = vpop.eup %4833  ;;  %4859 = vrcp.f32 %v2862_v18  ;;  %v2863_v38 = vadd.f32 1.0, %v4832_v39  ;;  %v2273_v3 = vpop.xlane.xlu0 %2272  ;;  %v1421_v2 = vcombine.high %v6313_v27, %v6313_v27  ;;  %v6615_v25 = vmul.f32 %v4558_v21, %v1867_v9 }
 0x14d   : > { %v4836_v61 = vpop.eup %4835  ;;  %v3885_v48 = vsel %vm3870_vm6, %v3441_v53, %v3884_v17  ;;  %v2864_v13 = vadd.f32 1.0, %v4834_v55  ;;  %4861 = vpow2.f32 %v4178_v14  ;;  %v4179_v35 = vmul.f32 -1.442695, %v2273_v3  ;;  %2378 = vadd.xlane.f32.xlu1 %v6418_v0 }
 0x14e   : > { %v4838_v26 = vpop.eup %4837  ;;  %3996 = vst.msk [vmem:[%s6520_s11 + $0x10] sm:$0xff] %vm3993_vm7, %v3885_v48  ;;  %v3445_v30 = vrot.slane %v4836_v61, %v5570_v5  ;;  %4863 = vrcp.f32 %v2863_v38  ;;  %v2275_v6 = vpop.xlane.xlu1 %2274  ;;  %v4495_v27 = vunpack.c.h.bf16 %v6400_v42  ;;  %v1129_v0 = vcombine.high %v6339_v44, %v6339_v44 }
 0x14f   : > { %v4840_v49 = vpop.eup %4839  ;;  %4865 = vrcp.f32 %v2864_v13  ;;  %v2865_v34 = vadd.f32 1.0, %v4838_v26  ;;  %v4180_v11 = vmul.f32 -1.442695, %v2275_v6  ;;  %2394 = vadd.xlane.f32.xlu0 %v6439_v37  ;;  %v6622_v23 = vmul.f32 %v4574_v47, %v1899_v41 }
 0x150   : > { %v4842_v7 = vpop.eup %4841  ;;  %v3449_v54 = vrot.slane %v4840_v49, %v5570_v5  ;;  %4867 = vpow2.f32 %v4179_v35  ;;  %v2277_v43 = vpop.xlane.xlu0 %2276  ;;  %v1931_v21 = vrot.slane %v1421_v2, %v5581_v20  ;;  %v4511_v37 = vunpack.c.h.bf16 %v6447_v52 }
 0x151   : > { %v4844_v19 = vpop.eup %4843  ;;  %4869 = vrcp.f32 %v2865_v34  ;;  %v2866_v63 = vadd.f32 1.0, %v4842_v7  ;;  %v4181_v9 = vmul.f32 -1.442695, %v2277_v43  ;;  %2410 = vadd.xlane.f32.xlu1 %v6488_v57  ;;  %v1178_v47 = vcombine.high %v6354_v16, %v6354_v16 }
 0x152   : > { %v4846_v32 = vpop.eup %4845  ;;  %v3886_v44 = vsel %vm3858_vm0, %v3449_v54, %v3445_v30  ;;  %v3453_v10 = vrot.slane %v4844_v19, %v5570_v5  ;;  %4871 = vpow2.f32 %v4180_v11  ;;  %v2279_v31 = vpop.xlane.xlu1 %2278  ;;  %v1743_v57 = vrot.slane %v1129_v0, %v5581_v20 }
 0x153   : > { %v4848_v58 = vpop.eup %4847  ;;  %4873 = vrcp.f32 %v2866_v63  ;;  %v2867_v12 = vadd.f32 1.0, %v4846_v32  ;;  %v4182_v22 = vmul.f32 -1.442695, %v2279_v31  ;;  %2426 = vadd.xlane.f32.xlu0 %v6508_v59  ;;  %v4527_v17 = vunpack.c.h.bf16 %v6513_v36 }
 0x154   : > { %v4850_v18 = vpop.eup %4849  ;;  %v3887_v52 = vsel %vm3860_vm1, %v3453_v10, %v3886_v44  ;;  %v3457_v40 = vrot.slane %v4848_v58, %v5570_v5  ;;  %4875 = vpow2.f32 %v4181_v9  ;;  %v2281_v39 = vpop.xlane.xlu0 %2280  ;;  %v6639_v59 = vmul.f32 %v4590_v15, %v1931_v21 }
 0x155   : > { %v4852_v53 = vpop.eup %4851  ;;  %4877 = vrcp.f32 %v2867_v12  ;;  %v2868_v16 = vadd.f32 1.0, %v4850_v18  ;;  %v4183_v14 = vmul.f32 -1.442695, %v2281_v39  ;;  %2442 = vadd.xlane.f32.xlu1 %v6540_v46  ;;  %v1775_v2 = vrot.slane %v1178_v47, %v5581_v20 }
 0x156   : > { %v4854_v55 = vpop.eup %4853  ;;  %v3888_v38 = vsel %vm3862_vm2, %v3457_v40, %v3887_v52  ;;  %v3461_v3 = vrot.slane %v4852_v53, %v5570_v5  ;;  %4879 = vpow2.f32 %v4182_v22  ;;  %v2283_v41 = vpop.xlane.xlu1 %2282  ;;  %v1227_v46 = vcombine.high %v6368_v60, %v6368_v60 }
 0x157   : > { %v4856_v61 = vpop.eup %4855  ;;  %4881 = vrcp.f32 %v2868_v16  ;;  %v2869_v48 = vadd.f32 1.0, %v4854_v55  ;;  %v4184_v13 = vmul.f32 -1.442695, %v2283_v41  ;;  %2348 = vadd.xlane.f32.xlu0 %v6549_v50  ;;  %v4543_v6 = vunpack.c.h.bf16 %v6543_v24 }
 0x158   : > { %v4858_v15 = vpop.eup %4857  ;;  %v3889_v35 = vsel %vm3864_vm3, %v3461_v3, %v3888_v38  ;;  %v3465_v26 = vrot.slane %v4856_v61, %v5570_v5  ;;  %4883 = vpow2.f32 %v4183_v14  ;;  %v2285_v30 = vpop.xlane.xlu0 %2284  ;;  %v6653_v50 = vmul.f32 %v4495_v27, %v1743_v57 }
 0x159   : > { %v4860_v49 = vpop.eup %4859  ;;  %4885 = vrcp.f32 %v2869_v48  ;;  %v2870_v34 = vadd.f32 1.0, %v4858_v15  ;;  %v4185_v11 = vmul.f32 -1.442695, %v2285_v30  ;;  %2364 = vadd.xlane.f32.xlu1 %v6557_v4  ;;  %v1276_v43 = vcombine.high %v6380_v28, %v6380_v28 }
 0x15a   : > { %v4862_v60 = vpop.eup %4861  ;;  %v3890_v0 = vsel %vm3866_vm4, %v3465_v26, %v3889_v35  ;;  %v3469_v7 = vrot.slane %v4860_v49, %v5570_v5  ;;  %4887 = vpow2.f32 %v4184_v13  ;;  %v2287_v54 = vpop.xlane.xlu1 %2286  ;;  %v6660_v4 = vmul.f32 %v4511_v37, %v1775_v2 }
 0x15b   : > { %v4864_v21 = vpop.eup %4863  ;;  %4889 = vrcp.f32 %v2870_v34  ;;  %v2871_v19 = vadd.f32 1.0, %v4862_v60  ;;  %v4186_v63 = vmul.f32 -1.442695, %v2287_v54  ;;  %2380 = vadd.xlane.f32.xlu0 %v6578_v45  ;;  %v1807_v44 = vrot.slane %v1227_v46, %v5581_v20 }
 0x15c   : > { %v4866_v42 = vpop.eup %4865  ;;  %v3891_v27 = vsel %vm3868_vm5, %v3469_v7, %v3890_v0  ;;  %v3473_v9 = vrot.slane %v4864_v21, %v5570_v5  ;;  %4891 = vpow2.f32 %v4185_v11  ;;  %v2289_v32 = vpop.xlane.xlu0 %2288  ;;  %v4559_v45 = vunpack.c.h.bf16 %v6560_v56 }
 0x15d   : > { %v4868_v10 = vpop.eup %4867  ;;  %v3477_v28 = vrot.slane %v4866_v42, %v5570_v5  ;;  %4893 = vrcp.f32 %v2871_v19  ;;  %v4187_v31 = vmul.f32 -1.442695, %v2289_v32  ;;  %2396 = vadd.xlane.f32.xlu1 %v6599_v1  ;;  %v1325_v22 = vcombine.high %v6394_v51, %v6394_v51 }
 0x15e   : > { %v4870_v37 = vpop.eup %4869  ;;  %v3892_v47 = vsel %vm3870_vm6, %v3473_v9, %v3891_v27  ;;  %v2872_v58 = vadd.f32 1.0, %v4868_v10  ;;  %4895 = vpow2.f32 %v4186_v63  ;;  %v2291_v12 = vpop.xlane.xlu1 %2290  ;;  %v1839_v1 = vrot.slane %v1276_v43, %v5581_v20 }
 0x15f   : > { %v4872_v57 = vpop.eup %4871  ;;  %3997 = vst.msk [vmem:[%s6520_s11 + $0x18] sm:$0xff] %vm3993_vm7, %v3892_v47  ;;  %v3481_v18 = vrot.slane %v4870_v37, %v5570_v5  ;;  %4897 = vpow2.f32 %v4187_v31  ;;  %v4188_v52 = vmul.f32 -1.442695, %v2291_v12  ;;  %2412 = vadd.xlane.f32.xlu0 %v6615_v25  ;;  %v2159_v16 = vmul.f32 %v4527_v17, %v1807_v44 }
 0x160   : > { %v4874_v40 = vpop.eup %4873  ;;  %4899 = vrcp.f32 %v2872_v58  ;;  %v2873_v39 = vadd.f32 1.0, %v4872_v57  ;;  %v2293_v53 = vpop.xlane.xlu0 %2292  ;;  %v4575_v51 = vunpack.c.h.bf16 %v6574_v62  ;;  %v1871_v61 = vrot.slane %v1325_v22, %v5581_v20 }
 0x161   : > { %v4876_v14 = vpop.eup %4875  ;;  %v3893_v55 = vsel %vm3858_vm0, %v3481_v18, %v3477_v28  ;;  %v3485_v38 = vrot.slane %v4874_v40, %v5570_v5  ;;  %4901 = vpow2.f32 %v4188_v52  ;;  %v4189_v3 = vmul.f32 -1.442695, %v2293_v53  ;;  %2428 = vadd.xlane.f32.xlu1 %v6622_v23 }
 0x162   : > { %v4878_v25 = vpop.eup %4877  ;;  %4903 = vrcp.f32 %v2873_v39  ;;  %v2874_v41 = vadd.f32 1.0, %v4876_v14  ;;  %v2295_v2 = vpop.xlane.xlu1 %2294  ;;  %v1374_v36 = vcombine.high %v6413_v29, %v6413_v29  ;;  %v4591_v35 = vunpack.c.h.bf16 %v6591_v8 }
 0x163   : > { %v4880_v17 = vpop.eup %4879  ;;  %v3894_v62 = vsel %vm3860_vm1, %v3485_v38, %v3893_v55  ;;  %v3489_v48 = vrot.slane %v4878_v25, %v5570_v5  ;;  %4905 = vpow2.f32 %v4189_v3  ;;  %v4190_v13 = vmul.f32 -1.442695, %v2295_v2  ;;  %2444 = vadd.xlane.f32.xlu0 %v6639_v59 }
 0x164   : > { %v4882_v46 = vpop.eup %4881  ;;  %4907 = vrcp.f32 %v2874_v41  ;;  %v2875_v23 = vadd.f32 1.0, %v4880_v17  ;;  %v2297_v15 = vpop.xlane.xlu0 %2296  ;;  %v1423_v26 = vcombine.high %v6429_v33, %v6429_v33  ;;  %v2167_v0 = vmul.f32 %v4543_v6, %v1839_v1 }
 0x165   : > { %v4884_v30 = vpop.eup %4883  ;;  %v3895_v29 = vsel %vm3862_vm2, %v3489_v48, %v3894_v62  ;;  %v3493_v49 = vrot.slane %v4882_v46, %v5570_v5  ;;  %4909 = vpow2.f32 %v4190_v13  ;;  %v4191_v34 = vmul.f32 -1.442695, %v2297_v15  ;;  %2350 = vadd.xlane.f32.xlu1 %v6653_v50 }
 0x166   : > { %v4886_v11 = vpop.eup %4885  ;;  %4911 = vrcp.f32 %v2875_v23  ;;  %v2876_v59 = vadd.f32 1.0, %v4884_v30  ;;  %v2299_v60 = vpop.xlane.xlu1 %2298  ;;  %v1903_v8 = vrot.slane %v1374_v36, %v5581_v20  ;;  %v2175_v63 = vmul.f32 %v4559_v45, %v1871_v61 }
 0x167   : > { %v4888_v7 = vpop.eup %4887  ;;  %v3896_v33 = vsel %vm3864_vm3, %v3493_v49, %v3895_v29  ;;  %v3497_v54 = vrot.slane %v4886_v11, %v5570_v5  ;;  %4913 = vpow2.f32 %v4191_v34  ;;  %v4192_v43 = vmul.f32 -1.442695, %v2299_v60  ;;  %2366 = vadd.xlane.f32.xlu0 %v6660_v4 }
 0x168   : > { %v4890_v21 = vpop.eup %4889  ;;  %4915 = vrcp.f32 %v2876_v59  ;;  %v2877_v50 = vadd.f32 1.0, %v4888_v7  ;;  %v2301_v19 = vpop.xlane.xlu0 %2300  ;;  %v1935_v24 = vrot.slane %v1423_v26, %v5581_v20  ;;  %v2183_v10 = vmul.f32 %v4575_v51, %v1903_v8 }
 0x169   : > { %v4892_v6 = vpop.eup %4891  ;;  %v3897_v42 = vsel %vm3866_vm4, %v3497_v54, %v3896_v33  ;;  %v3501_v27 = vrot.slane %v4890_v21, %v5570_v5  ;;  %4917 = vpow2.f32 %v4192_v43  ;;  %v4193_v9 = vmul.f32 -1.442695, %v2301_v19  ;;  %2382 = vadd.xlane.f32.xlu1 %v2159_v16 }
 0x16a   : > { %v4894_v32 = vpop.eup %4893  ;;  %4919 = vrcp.f32 %v2877_v50  ;;  %v2878_v4 = vadd.f32 1.0, %v4892_v6  ;;  %v2303_v44 = vpop.xlane.xlu1 %2302  ;;  %v2191_v58 = vmul.f32 %v4591_v35, %v1935_v24 }
 0x16b   : > { %v4896_v28 = vpop.eup %4895  ;;  %v3898_v31 = vsel %vm3868_vm5, %v3501_v27, %v3897_v42  ;;  %v3505_v56 = vrot.slane %v4894_v32, %v5570_v5  ;;  %4921 = vpow2.f32 %v4193_v9  ;;  %v4194_v20 = vmul.f32 -1.442695, %v2303_v44  ;;  %2398 = vadd.xlane.f32.xlu0 %v2167_v0 }
 0x16c   : > { %v4898_v45 = vpop.eup %4897  ;;  %4923 = vrcp.f32 %v2878_v4  ;;  %v2879_v37 = vadd.f32 1.0, %v4896_v28  ;;  %v2305_v47 = vpop.xlane.xlu0 %2304 }
 0x16d   : > { %v4900_v12 = vpop.eup %4899  ;;  %v3899_v22 = vsel %vm3870_vm6, %v3505_v56, %v3898_v31  ;;  %v2880_v57 = vadd.f32 1.0, %v4898_v45  ;;  %4925 = vpow2.f32 %v4194_v20  ;;  %v4195_v18 = vmul.f32 -1.442695, %v2305_v47  ;;  %2414 = vadd.xlane.f32.xlu1 %v2175_v63 }
 0x16e   : > { %v4902_v52 = vpop.eup %4901  ;;  %3998 = vst.msk [vmem:[%s6520_s11 + $0x20] sm:$0xff] %vm3993_vm7, %v3899_v22  ;;  %v3509_v1 = vrot.slane %v4900_v12, %v5570_v5  ;;  %4927 = vrcp.f32 %v2879_v37  ;;  %v2307_v40 = vpop.xlane.xlu1 %2306 }
 0x16f   : > { %v4904_v39 = vpop.eup %4903  ;;  %4929 = vrcp.f32 %v2880_v57  ;;  %v2881_v53 = vadd.f32 1.0, %v4902_v52  ;;  %v4196_v16 = vmul.f32 -1.442695, %v2307_v40  ;;  %2430 = vadd.xlane.f32.xlu0 %v2183_v10 }
 0x170   : > { %v4906_v51 = vpop.eup %4905  ;;  %v3513_v14 = vrot.slane %v4904_v39, %v5570_v5  ;;  %4931 = vpow2.f32 %v4195_v18  ;;  %v2309_v55 = vpop.xlane.xlu0 %2308 }
 0x171   : > { %v4908_v38 = vpop.eup %4907  ;;  %4933 = vrcp.f32 %v2881_v53  ;;  %v2882_v3 = vadd.f32 1.0, %v4906_v51  ;;  %v4197_v25 = vmul.f32 -1.442695, %v2309_v55  ;;  %2446 = vadd.xlane.f32.xlu1 %v2191_v58 }
 0x172   : > { %v4910_v41 = vpop.eup %4909  ;;  %v3900_v2 = vsel %vm3858_vm0, %v3513_v14, %v3509_v1  ;;  %v3517_v61 = vrot.slane %v4908_v38, %v5570_v5  ;;  %4935 = vpow2.f32 %v4196_v16  ;;  %v2311_v36 = vpop.xlane.xlu1 %2310 }
 0x173   : > { %v4912_v17 = vpop.eup %4911  ;;  %4937 = vrcp.f32 %v2882_v3  ;;  %v2883_v62 = vadd.f32 1.0, %v4910_v41  ;;  %v4198_v48 = vmul.f32 -1.442695, %v2311_v36 }
 0x174   : > { %v4914_v13 = vpop.eup %4913  ;;  %v3901_v46 = vsel %vm3860_vm1, %v3517_v61, %v3900_v2  ;;  %v3521_v23 = vrot.slane %v4912_v17, %v5570_v5  ;;  %4939 = vpow2.f32 %v4197_v25  ;;  %v2313_v15 = vpop.xlane.xlu0 %2312 }
 0x175   : > { %v4916_v35 = vpop.eup %4915  ;;  %4941 = vrcp.f32 %v2883_v62  ;;  %v2884_v26 = vadd.f32 1.0, %v4914_v13  ;;  %v4199_v30 = vmul.f32 -1.442695, %v2313_v15 }
 0x176   : > { %v4918_v29 = vpop.eup %4917  ;;  %v3902_v49 = vsel %vm3862_vm2, %v3521_v23, %v3901_v46  ;;  %v3525_v34 = vrot.slane %v4916_v35, %v5570_v5  ;;  %4943 = vpow2.f32 %v4198_v48  ;;  %v2315_v11 = vpop.xlane.xlu1 %2314 }
 0x177   : > { %v4920_v59 = vpop.eup %4919  ;;  %4945 = vrcp.f32 %v2884_v26  ;;  %v2885_v60 = vadd.f32 1.0, %v4918_v29  ;;  %v4200_v0 = vmul.f32 -1.442695, %v2315_v11 }
 0x178   : > { %v4922_v8 = vpop.eup %4921  ;;  %v3903_v7 = vsel %vm3864_vm3, %v3525_v34, %v3902_v49  ;;  %v3529_v33 = vrot.slane %v4920_v59, %v5570_v5  ;;  %4947 = vpow2.f32 %v4199_v30  ;;  %v2317_v54 = vpop.xlane.xlu0 %2316 }
 0x179   : > { %v4924_v43 = vpop.eup %4923  ;;  %4949 = vrcp.f32 %v2885_v60  ;;  %v2886_v21 = vadd.f32 1.0, %v4922_v8  ;;  %v4201_v50 = vmul.f32 -1.442695, %v2317_v54 }
 0x17a   : > { %v4926_v19 = vpop.eup %4925  ;;  %v3904_v63 = vsel %vm3866_vm4, %v3529_v33, %v3903_v7  ;;  %v3533_v24 = vrot.slane %v4924_v43, %v5570_v5  ;;  %4951 = vpow2.f32 %v4200_v0  ;;  %v2319_v6 = vpop.xlane.xlu1 %2318 }
 0x17b   : > { %v4928_v42 = vpop.eup %4927  ;;  %4953 = vrcp.f32 %v2886_v21  ;;  %v2887_v27 = vadd.f32 1.0, %v4926_v19  ;;  %v4202_v9 = vmul.f32 -1.442695, %v2319_v6 }
 0x17c   : > { %v4930_v32 = vpop.eup %4929  ;;  %v3905_v4 = vsel %vm3868_vm5, %v3533_v24, %v3904_v63  ;;  %v3537_v44 = vrot.slane %v4928_v42, %v5570_v5  ;;  %4955 = vpow2.f32 %v4201_v50  ;;  %v2321_v10 = vpop.xlane.xlu0 %2320 }
 0x17d   : > { %v4932_v28 = vpop.eup %4931  ;;  %v3541_v31 = vrot.slane %v4930_v32, %v5570_v5  ;;  %4957 = vrcp.f32 %v2887_v27  ;;  %v4203_v56 = vmul.f32 -1.442695, %v2321_v10 }
 0x17e   : > { %v4934_v20 = vpop.eup %4933  ;;  %v3906_v45 = vsel %vm3870_vm6, %v3537_v44, %v3905_v4  ;;  %v2888_v37 = vadd.f32 1.0, %v4932_v28  ;;  %4959 = vpow2.f32 %v4202_v9  ;;  %v2323_v47 = vpop.xlane.xlu1 %2322 }
 0x17f   : > { %v4936_v58 = vpop.eup %4935  ;;  %3999 = vst.msk [vmem:[%s6520_s11 + $0x28] sm:$0xff] %vm3993_vm7, %v3906_v45  ;;  %v3545_v12 = vrot.slane %v4934_v20, %v5570_v5  ;;  %4961 = vpow2.f32 %v4203_v56  ;;  %v4204_v22 = vmul.f32 -1.442695, %v2323_v47 }
 0x180   : > { %v4938_v57 = vpop.eup %4937  ;;  %4963 = vrcp.f32 %v2888_v37  ;;  %v2889_v18 = vadd.f32 1.0, %v4936_v58  ;;  %v2325_v52 = vpop.xlane.xlu0 %2324 }
 0x181   : > { %v4940_v1 = vpop.eup %4939  ;;  %v3907_v40 = vsel %vm3858_vm0, %v3545_v12, %v3541_v31  ;;  %v3549_v39 = vrot.slane %v4938_v57, %v5570_v5  ;;  %4965 = vpow2.f32 %v4204_v22  ;;  %v4205_v53 = vmul.f32 -1.442695, %v2325_v52 }
 0x182   : > { %v4942_v16 = vpop.eup %4941  ;;  %4967 = vrcp.f32 %v2889_v18  ;;  %v2890_v51 = vadd.f32 1.0, %v4940_v1  ;;  %v2327_v14 = vpop.xlane.xlu1 %2326 }
 0x183   : > { %v4944_v55 = vpop.eup %4943  ;;  %v3908_v38 = vsel %vm3860_vm1, %v3549_v39, %v3907_v40  ;;  %v3553_v3 = vrot.slane %v4942_v16, %v5570_v5  ;;  %4969 = vpow2.f32 %v4205_v53  ;;  %v4206_v25 = vmul.f32 -1.442695, %v2327_v14 }
 0x184   : > { %v4946_v41 = vpop.eup %4945  ;;  %4971 = vrcp.f32 %v2890_v51  ;;  %v2891_v2 = vadd.f32 1.0, %v4944_v55  ;;  %v2329_v61 = vpop.xlane.xlu0 %2328 }
 0x185   : > { %v4948_v36 = vpop.eup %4947  ;;  %v3909_v17 = vsel %vm3862_vm2, %v3553_v3, %v3908_v38  ;;  %v3557_v62 = vrot.slane %v4946_v41, %v5570_v5  ;;  %4973 = vpow2.f32 %v4206_v25  ;;  %v4207_v48 = vmul.f32 -1.442695, %v2329_v61 }
 0x186   : > { %v4950_v13 = vpop.eup %4949  ;;  %4975 = vrcp.f32 %v2891_v2  ;;  %v2892_v46 = vadd.f32 1.0, %v4948_v36  ;;  %v2331_v23 = vpop.xlane.xlu1 %2330 }
 0x187   : > { %v4952_v15 = vpop.eup %4951  ;;  %v3910_v35 = vsel %vm3864_vm3, %v3557_v62, %v3909_v17  ;;  %v3561_v26 = vrot.slane %v4950_v13, %v5570_v5  ;;  %4977 = vpow2.f32 %v4207_v48  ;;  %v4208_v30 = vmul.f32 -1.442695, %v2331_v23 }
 0x188   : > { %v4954_v29 = vpop.eup %4953  ;;  %4979 = vrcp.f32 %v2892_v46  ;;  %v2893_v49 = vadd.f32 1.0, %v4952_v15  ;;  %v2333_v34 = vpop.xlane.xlu0 %2332 }
 0x189   : > { %v4956_v11 = vpop.eup %4955  ;;  %v3911_v59 = vsel %vm3866_vm4, %v3561_v26, %v3910_v35  ;;  %v3565_v60 = vrot.slane %v4954_v29, %v5570_v5  ;;  %4981 = vpow2.f32 %v4208_v30  ;;  %v4209_v0 = vmul.f32 -1.442695, %v2333_v34 }
 0x18a   : > { %v4958_v8 = vpop.eup %4957  ;;  %4983 = vrcp.f32 %v2893_v49  ;;  %v2894_v7 = vadd.f32 1.0, %v4956_v11  ;;  %v2335_v33 = vpop.xlane.xlu1 %2334 }
 0x18b   : > { %v4960_v54 = vpop.eup %4959  ;;  %v3912_v43 = vsel %vm3868_vm5, %v3565_v60, %v3911_v59  ;;  %v3569_v21 = vrot.slane %v4958_v8, %v5570_v5  ;;  %4985 = vpow2.f32 %v4209_v0  ;;  %v4210_v50 = vmul.f32 -1.442695, %v2335_v33 }
 0x18c   : > { %v4962_v19 = vpop.eup %4961  ;;  %4987 = vrcp.f32 %v2894_v7  ;;  %v2895_v63 = vadd.f32 1.0, %v4960_v54  ;;  %v2337_v24 = vpop.xlane.xlu0 %2336 }
 0x18d   : > { %v4964_v6 = vpop.eup %4963  ;;  %v3913_v42 = vsel %vm3870_vm6, %v3569_v21, %v3912_v43  ;;  %v2896_v27 = vadd.f32 1.0, %v4962_v19  ;;  %4989 = vpow2.f32 %v4210_v50  ;;  %v4211_v9 = vmul.f32 -1.442695, %v2337_v24 }
 0x18e   : > { %v4966_v32 = vpop.eup %4965  ;;  %4000 = vst.msk [vmem:[%s6520_s11 + $0x30] sm:$0xff] %vm3993_vm7, %v3913_v42  ;;  %v3573_v4 = vrot.slane %v4964_v6, %v5570_v5  ;;  %4991 = vrcp.f32 %v2895_v63  ;;  %v2339_v44 = vpop.xlane.xlu1 %2338 }
 0x18f   : > { %v4968_v10 = vpop.eup %4967  ;;  %4993 = vrcp.f32 %v2896_v27  ;;  %v2897_v28 = vadd.f32 1.0, %v4966_v32  ;;  %v4212_v31 = vmul.f32 -1.442695, %v2339_v44 }
 0x190   : > { %v4970_v56 = vpop.eup %4969  ;;  %v3577_v20 = vrot.slane %v4968_v10, %v5570_v5  ;;  %4995 = vpow2.f32 %v4211_v9  ;;  %v2353_v45 = vpop.xlane.xlu0 %2352 }
 0x191   : > { %v4972_v37 = vpop.eup %4971  ;;  %4997 = vrcp.f32 %v2897_v28  ;;  %v2898_v47 = vadd.f32 1.0, %v4970_v56  ;;  %v4219_v58 = vmul.f32 -1.442695, %v2353_v45 }
 0x192   : > { %v4974_v12 = vpop.eup %4973  ;;  %v3914_v22 = vsel %vm3858_vm0, %v3577_v20, %v3573_v4  ;;  %v3581_v57 = vrot.slane %v4972_v37, %v5570_v5  ;;  %4999 = vpow2.f32 %v4212_v31  ;;  %v2355_v18 = vpop.xlane.xlu1 %2354 }
 0x193   : > { %v4976_v52 = vpop.eup %4975  ;;  %5001 = vrcp.f32 %v2898_v47  ;;  %v2899_v1 = vadd.f32 1.0, %v4974_v12  ;;  %v4220_v40 = vmul.f32 -1.442695, %v2355_v18 }
 0x194   : > { %v4978_v39 = vpop.eup %4977  ;;  %v3915_v53 = vsel %vm3860_vm1, %v3581_v57, %v3914_v22  ;;  %v3585_v16 = vrot.slane %v4976_v52, %v5570_v5  ;;  %5003 = vpow2.f32 %v4219_v58  ;;  %v2369_v51 = vpop.xlane.xlu0 %2368 }
 0x195   : > { %v4980_v14 = vpop.eup %4979  ;;  %5005 = vrcp.f32 %v2899_v1  ;;  %v2900_v55 = vadd.f32 1.0, %v4978_v39  ;;  %v4227_v38 = vmul.f32 -1.442695, %v2369_v51 }
 0x196   : > { %v4982_v3 = vpop.eup %4981  ;;  %v3916_v25 = vsel %vm3862_vm2, %v3585_v16, %v3915_v53  ;;  %v3589_v41 = vrot.slane %v4980_v14, %v5570_v5  ;;  %5007 = vpow2.f32 %v4220_v40  ;;  %v2371_v2 = vpop.xlane.xlu1 %2370 }
 0x197   : > { %v4984_v61 = vpop.eup %4983  ;;  %5009 = vrcp.f32 %v2900_v55  ;;  %v2901_v36 = vadd.f32 1.0, %v4982_v3  ;;  %v4228_v17 = vmul.f32 -1.442695, %v2371_v2 }
 0x198   : > { %v4986_v62 = vpop.eup %4985  ;;  %v3917_v48 = vsel %vm3864_vm3, %v3589_v41, %v3916_v25  ;;  %v3593_v13 = vrot.slane %v4984_v61, %v5570_v5  ;;  %5011 = vpow2.f32 %v4227_v38  ;;  %v2385_v46 = vpop.xlane.xlu0 %2384 }
 0x199   : > { %v4988_v23 = vpop.eup %4987  ;;  %5013 = vrcp.f32 %v2901_v36  ;;  %v2902_v15 = vadd.f32 1.0, %v4986_v62  ;;  %v4235_v35 = vmul.f32 -1.442695, %v2385_v46 }
 0x19a   : > { %v4990_v26 = vpop.eup %4989  ;;  %v3918_v30 = vsel %vm3866_vm4, %v3593_v13, %v3917_v48  ;;  %v3597_v29 = vrot.slane %v4988_v23, %v5570_v5  ;;  %5015 = vpow2.f32 %v4228_v17  ;;  %v2387_v49 = vpop.xlane.xlu1 %2386 }
 0x19b   : > { %v4992_v34 = vpop.eup %4991  ;;  %5017 = vrcp.f32 %v2902_v15  ;;  %v2903_v11 = vadd.f32 1.0, %v4990_v26  ;;  %v4236_v59 = vmul.f32 -1.442695, %v2387_v49 }
 0x19c   : > { %v4994_v60 = vpop.eup %4993  ;;  %v3919_v0 = vsel %vm3868_vm5, %v3597_v29, %v3918_v30  ;;  %v3601_v8 = vrot.slane %v4992_v34, %v5570_v5  ;;  %5019 = vpow2.f32 %v4235_v35  ;;  %v2401_v7 = vpop.xlane.xlu0 %2400 }
 0x19d   : > { %v4996_v33 = vpop.eup %4995  ;;  %v3605_v54 = vrot.slane %v4994_v60, %v5570_v5  ;;  %5021 = vrcp.f32 %v2903_v11  ;;  %v4243_v43 = vmul.f32 -1.442695, %v2401_v7 }
 0x19e   : > { %v4998_v21 = vpop.eup %4997  ;;  %v3920_v50 = vsel %vm3870_vm6, %v3601_v8, %v3919_v0  ;;  %v2904_v19 = vadd.f32 1.0, %v4996_v33  ;;  %5023 = vpow2.f32 %v4236_v59  ;;  %v2403_v63 = vpop.xlane.xlu1 %2402 }
 0x19f   : > { %v5000_v24 = vpop.eup %4999  ;;  %4001 = vst.msk [vmem:[%s6520_s11 + $0x38] sm:$0xff] %vm3993_vm7, %v3920_v50  ;;  %v3609_v6 = vrot.slane %v4998_v21, %v5570_v5  ;;  %5025 = vpow2.f32 %v4243_v43  ;;  %v4244_v42 = vmul.f32 -1.442695, %v2403_v63 }
 0x1a0   : > { %v5002_v27 = vpop.eup %5001  ;;  %5027 = vrcp.f32 %v2904_v19  ;;  %v2905_v9 = vadd.f32 1.0, %v5000_v24  ;;  %v2417_v32 = vpop.xlane.xlu0 %2416 }
 0x1a1   : > { %v5004_v4 = vpop.eup %5003  ;;  %v3921_v44 = vsel %vm3858_vm0, %v3609_v6, %v3605_v54  ;;  %v3613_v10 = vrot.slane %v5002_v27, %v5570_v5  ;;  %5029 = vpow2.f32 %v4244_v42  ;;  %v4251_v28 = vmul.f32 -1.442695, %v2417_v32 }
 0x1a2   : > { %v5006_v31 = vpop.eup %5005  ;;  %5031 = vrcp.f32 %v2905_v9  ;;  %v2912_v56 = vadd.f32 1.0, %v5004_v4  ;;  %v2419_v20 = vpop.xlane.xlu1 %2418 }
 0x1a3   : > { %v5008_v45 = vpop.eup %5007  ;;  %v3922_v37 = vsel %vm3860_vm1, %v3613_v10, %v3921_v44  ;;  %v3617_v47 = vrot.slane %v5006_v31, %v5570_v5  ;;  %5033 = vpow2.f32 %v4251_v28  ;;  %v4252_v58 = vmul.f32 -1.442695, %v2419_v20 }
 0x1a4   : > { %v5010_v12 = vpop.eup %5009  ;;  %5035 = vrcp.f32 %v2912_v56  ;;  %v2913_v22 = vadd.f32 1.0, %v5008_v45  ;;  %v2433_v57 = vpop.xlane.xlu0 %2432 }
 0x1a5   : > { %v5012_v18 = vpop.eup %5011  ;;  %v3923_v52 = vsel %vm3862_vm2, %v3617_v47, %v3922_v37  ;;  %v3621_v1 = vrot.slane %v5010_v12, %v5570_v5  ;;  %5037 = vpow2.f32 %v4252_v58  ;;  %v4259_v40 = vmul.f32 -1.442695, %v2433_v57 }
 0x1a6   : > { %v5014_v39 = vpop.eup %5013  ;;  %5039 = vrcp.f32 %v2913_v22  ;;  %v2920_v53 = vadd.f32 1.0, %v5012_v18  ;;  %v2435_v16 = vpop.xlane.xlu1 %2434 }
 0x1a7   : > { %v5016_v51 = vpop.eup %5015  ;;  %v3924_v14 = vsel %vm3864_vm3, %v3621_v1, %v3923_v52  ;;  %v3625_v55 = vrot.slane %v5014_v39, %v5570_v5  ;;  %5041 = vpow2.f32 %v4259_v40  ;;  %v4260_v38 = vmul.f32 -1.442695, %v2435_v16 }
 0x1a8   : > { %v5018_v3 = vpop.eup %5017  ;;  %5043 = vrcp.f32 %v2920_v53  ;;  %v2921_v25 = vadd.f32 1.0, %v5016_v51  ;;  %v2341_v41 = vpop.xlane.xlu0 %2340 }
 0x1a9   : > { %v5020_v2 = vpop.eup %5019  ;;  %v3925_v61 = vsel %vm3866_vm4, %v3625_v55, %v3924_v14  ;;  %v3629_v36 = vrot.slane %v5018_v3, %v5570_v5  ;;  %5045 = vpow2.f32 %v4260_v38  ;;  %v4213_v17 = vmul.f32 -1.442695, %v2341_v41 }
 0x1aa   : > { %v5022_v62 = vpop.eup %5021  ;;  %5047 = vrcp.f32 %v2921_v25  ;;  %v2928_v48 = vadd.f32 1.0, %v5020_v2  ;;  %v2357_v13 = vpop.xlane.xlu1 %2356 }
 0x1ab   : > { %v5024_v46 = vpop.eup %5023  ;;  %v3926_v23 = vsel %vm3868_vm5, %v3629_v36, %v3925_v61  ;;  %v3633_v15 = vrot.slane %v5022_v62, %v5570_v5  ;;  %5049 = vpow2.f32 %v4213_v17  ;;  %v4221_v35 = vmul.f32 -1.442695, %v2357_v13 }
 0x1ac   : > { %v5026_v26 = vpop.eup %5025  ;;  %5051 = vrcp.f32 %v2928_v48  ;;  %v2929_v30 = vadd.f32 1.0, %v5024_v46  ;;  %v2373_v29 = vpop.xlane.xlu0 %2372 }
 0x1ad   : > { %v5028_v49 = vpop.eup %5027  ;;  %v3927_v34 = vsel %vm3870_vm6, %v3633_v15, %v3926_v23  ;;  %v2936_v11 = vadd.f32 1.0, %v5026_v26  ;;  %5053 = vpow2.f32 %v4221_v35  ;;  %v4229_v59 = vmul.f32 -1.442695, %v2373_v29 }
 0x1ae   : > { %v5030_v60 = vpop.eup %5029  ;;  %4002 = vst.msk [vmem:[%s6520_s11 + $0x40] sm:$0xff] %vm3993_vm7, %v3927_v34  ;;  %v3637_v0 = vrot.slane %v5028_v49, %v5570_v5  ;;  %5055 = vrcp.f32 %v2929_v30  ;;  %v2389_v8 = vpop.xlane.xlu1 %2388 }
 0x1af   : > { %v5032_v7 = vpop.eup %5031  ;;  %5057 = vrcp.f32 %v2936_v11  ;;  %v2937_v33 = vadd.f32 1.0, %v5030_v60  ;;  %v4237_v54 = vmul.f32 -1.442695, %v2389_v8 }
 0x1b0   : > { %v5034_v43 = vpop.eup %5033  ;;  %v3641_v21 = vrot.slane %v5032_v7, %v5570_v5  ;;  %5059 = vpow2.f32 %v4229_v59  ;;  %v2405_v50 = vpop.xlane.xlu0 %2404 }
 0x1b1   : > { %v5036_v19 = vpop.eup %5035  ;;  %5061 = vrcp.f32 %v2937_v33  ;;  %v2944_v63 = vadd.f32 1.0, %v5034_v43  ;;  %v4245_v24 = vmul.f32 -1.442695, %v2405_v50 }
 0x1b2   : > { %v5038_v6 = vpop.eup %5037  ;;  %v6781_v42 = vsel %vm3858_vm0, %v3641_v21, %v3637_v0  ;;  %v3669_v27 = vrot.slane %v5036_v19, %v5570_v5  ;;  %5063 = vpow2.f32 %v4237_v54  ;;  %v2421_v9 = vpop.xlane.xlu1 %2420 }
 0x1b3   : > { %v5040_v32 = vpop.eup %5039  ;;  %5065 = vrcp.f32 %v2944_v63  ;;  %v2945_v4 = vadd.f32 1.0, %v5038_v6  ;;  %v4253_v44 = vmul.f32 -1.442695, %v2421_v9 }
 0x1b4   : > { %v5042_v10 = vpop.eup %5041  ;;  %v3673_v28 = vrot.slane %v5040_v32, %v5570_v5  ;;  %5067 = vpow2.f32 %v4245_v24  ;;  %v2437_v31 = vpop.xlane.xlu0 %2436 }
 0x1b5   : > { %v5044_v56 = vpop.eup %5043  ;;  %5069 = vrcp.f32 %v2945_v4  ;;  %v2952_v20 = vadd.f32 1.0, %v5042_v10  ;;  %v4261_v45 = vmul.f32 -1.442695, %v2437_v31 }
 0x1b6   : > { %v5046_v37 = vpop.eup %5045  ;;  %v6786_v47 = vsel %vm3858_vm0, %v3673_v28, %v3669_v27  ;;  %v3701_v58 = vrot.slane %v5044_v56, %v5570_v5  ;;  %5071 = vpow2.f32 %v4253_v44  ;;  %v2343_v12 = vpop.xlane.xlu1 %2342 }
 0x1b7   : > { %v5048_v22 = vpop.eup %5047  ;;  %5073 = vrcp.f32 %v2952_v20  ;;  %v2953_v57 = vadd.f32 1.0, %v5046_v37  ;;  %v4214_v3 = vmul.f32 -1.442695, %v2343_v12 }
 0x1b8   : > { %v5050_v18 = vpop.eup %5049  ;;  %v3705_v52 = vrot.slane %v5048_v22, %v5570_v5  ;;  %5075 = vpow2.f32 %v4261_v45  ;;  %v2359_v1 = vpop.xlane.xlu0 %2358 }
 0x1b9   : > { %v5052_v40 = vpop.eup %5051  ;;  %5077 = vrcp.f32 %v2953_v57  ;;  %v2906_v39 = vadd.f32 1.0, %v5050_v18  ;;  %v4222_v17 = vmul.f32 -1.442695, %v2359_v1 }
 0x1ba   : > { %v5054_v53 = vpop.eup %5053  ;;  %v6791_v16 = vsel %vm3858_vm0, %v3705_v52, %v3701_v58  ;;  %v3733_v51 = vrot.slane %v5052_v40, %v5570_v5  ;;  %v2375_v14 = vpop.xlane.xlu1 %2374 }
 0x1bb   : > { %v5056_v55 = vpop.eup %5055  ;;  %5079 = vrcp.f32 %v2906_v39  ;;  %v2914_v38 = vadd.f32 1.0, %v5054_v53  ;;  %v4230_v35 = vmul.f32 -1.442695, %v2375_v14 }
 0x1bc   : > { %v5058_v25 = vpop.eup %5057  ;;  %v3737_v41 = vrot.slane %v5056_v55, %v5570_v5  ;;  %v2391_v2 = vpop.xlane.xlu0 %2390 }
 0x1bd   : > { %v5060_v61 = vpop.eup %5059  ;;  %v3765_v36 = vrot.slane %v5058_v25, %v5570_v5  ;;  %5081 = vrcp.f32 %v2914_v38  ;;  %v4238_v59 = vmul.f32 -1.442695, %v2391_v2 }
 0x1be   : > { %v5062_v62 = vpop.eup %5061  ;;  %v6797_v48 = vsel %vm3858_vm0, %v3737_v41, %v3733_v51  ;;  %v2922_v13 = vadd.f32 1.0, %v5060_v61  ;;  %v2407_v46 = vpop.xlane.xlu1 %2406  ;;  %5083 = vpow2.f32 %v4214_v3 }
 0x1bf   : > { %v5064_v23 = vpop.eup %5063  ;;  %v3769_v15 = vrot.slane %v5062_v62, %v5570_v5  ;;  %v4246_v54 = vmul.f32 -1.442695, %v2407_v46 }
 0x1c0   : > { %v5066_v26 = vpop.eup %5065  ;;  %5085 = vrcp.f32 %v2922_v13  ;;  %v2930_v30 = vadd.f32 1.0, %v5064_v23  ;;  %v2423_v29 = vpop.xlane.xlu0 %2422 }
 0x1c1   : > { %v5068_v49 = vpop.eup %5067  ;;  %v6801_v34 = vsel %vm3858_vm0, %v3769_v15, %v3765_v36  ;;  %v3797_v11 = vrot.slane %v5066_v26, %v5570_v5  ;;  %5087 = vpow2.f32 %v4222_v17  ;;  %v4254_v6 = vmul.f32 -1.442695, %v2423_v29 }
 0x1c2   : > { %v5070_v60 = vpop.eup %5069  ;;  %5089 = vrcp.f32 %v2930_v30  ;;  %v2938_v0 = vadd.f32 1.0, %v5068_v49  ;;  %v2439_v8 = vpop.xlane.xlu1 %2438 }
 0x1c3   : > { %v5072_v7 = vpop.eup %5071  ;;  %v3801_v33 = vrot.slane %v5070_v60, %v5570_v5  ;;  %5091 = vpow2.f32 %v4230_v35  ;;  %v4262_v32 = vmul.f32 -1.442695, %v2439_v8 }
 0x1c4   : > { %v5074_v43 = vpop.eup %5073  ;;  %5093 = vrcp.f32 %v2938_v0  ;;  %v2946_v21 = vadd.f32 1.0, %v5072_v7  ;;  %v2345_v50 = vpop.xlane.xlu0 %2344 }
 0x1c5   : > { %v5076_v19 = vpop.eup %5075  ;;  %v6806_v63 = vsel %vm3858_vm0, %v3801_v33, %v3797_v11  ;;  %v3829_v24 = vrot.slane %v5074_v43, %v5570_v5  ;;  %5095 = vpow2.f32 %v4238_v59  ;;  %v4215_v10 = vmul.f32 -1.442695, %v2345_v50 }
 0x1c6   : > { %v5078_v27 = vpop.eup %5077  ;;  %5097 = vrcp.f32 %v2946_v21  ;;  %v2954_v9 = vadd.f32 1.0, %v5076_v19  ;;  %v2361_v4 = vpop.xlane.xlu1 %2360 }
 0x1c7   : > { %v3833_v44 = vrot.slane %v5078_v27, %v5570_v5  ;;  %5099 = vpow2.f32 %v4246_v54  ;;  %v4223_v31 = vmul.f32 -1.442695, %v2361_v4 }
 0x1c8   : > { %v5080_v28 = vpop.eup %5079  ;;  %5101 = vrcp.f32 %v2954_v9  ;;  %v2377_v56 = vpop.xlane.xlu0 %2376 }
 0x1c9   : > { %v3970_v20 = vsel %vm3858_vm0, %v3833_v44, %v3829_v24  ;;  %v3645_v45 = vrot.slane %v5080_v28, %v5570_v5  ;;  %5103 = vpow2.f32 %v4254_v6  ;;  %v4231_v37 = vmul.f32 -1.442695, %v2377_v56 }
 0x1ca   : > { %v5082_v58 = vpop.eup %5081  ;;  %5105 = vpow2.f32 %v4262_v32  ;;  %v2393_v12 = vpop.xlane.xlu1 %2392 }
 0x1cb   : > { %v6814_v22 = vsel %vm3860_vm1, %v3645_v45, %v6781_v42  ;;  %v3677_v57 = vrot.slane %v5082_v58, %v5570_v5  ;;  %5107 = vpow2.f32 %v4215_v10  ;;  %v4239_v18 = vmul.f32 -1.442695, %v2393_v12  ;;  %v5084_v52 = vpop.eup %5083 }
 0x1cc   : > { %5109 = vpow2.f32 %v4223_v31  ;;  %v2409_v1 = vpop.xlane.xlu0 %2408  ;;  %v2907_v38 = vadd.f32 1.0, %v5084_v52 }
 0x1cd   : > { %v5086_v40 = vpop.eup %5085  ;;  %v6819_v39 = vsel %vm3860_vm1, %v3677_v57, %v6786_v47  ;;  %5111 = vpow2.f32 %v4231_v37  ;;  %v4247_v14 = vmul.f32 -1.442695, %v2409_v1 }
 0x1ce   : > { %v5088_v53 = vpop.eup %5087  ;;  %v3709_v51 = vrot.slane %v5086_v40, %v5570_v5  ;;  %v2425_v55 = vpop.xlane.xlu1 %2424  ;;  %5113 = vpow2.f32 %v4239_v18 }
 0x1cf   : > { %v5090_v42 = vpop.eup %5089  ;;  %v4255_v2 = vmul.f32 -1.442695, %v2425_v55  ;;  %v2915_v36 = vadd.f32 1.0, %v5088_v53  ;;  %5115 = vpow2.f32 %v4247_v14 }
 0x1d0   : > { %v5092_v3 = vpop.eup %5091  ;;  %v6824_v25 = vsel %vm3860_vm1, %v3709_v51, %v6791_v16  ;;  %v3741_v41 = vrot.slane %v5090_v42, %v5570_v5  ;;  %v2441_v61 = vpop.xlane.xlu0 %2440  ;;  %5117 = vrcp.f32 %v2907_v38 }
 0x1d1   : > { %v5094_v47 = vpop.eup %5093  ;;  %v4263_v46 = vmul.f32 -1.442695, %v2441_v61  ;;  %v2923_v16 = vadd.f32 1.0, %v5092_v3  ;;  %5119 = vpow2.f32 %v4255_v2 }
 0x1d2   : > { %v5096_v17 = vpop.eup %5095  ;;  %v6829_v62 = vsel %vm3860_vm1, %v3741_v41, %v6797_v48  ;;  %v3773_v13 = vrot.slane %v5094_v47, %v5570_v5  ;;  %v2347_v23 = vpop.xlane.xlu1 %2346  ;;  %5121 = vrcp.f32 %v2915_v36 }
 0x1d3   : > { %v5098_v15 = vpop.eup %5097  ;;  %v4216_v29 = vmul.f32 -1.442695, %v2347_v23  ;;  %v2931_v11 = vadd.f32 1.0, %v5096_v17  ;;  %5123 = vpow2.f32 %v4263_v46 }
 0x1d4   : > { %v5100_v35 = vpop.eup %5099  ;;  %v6834_v26 = vsel %vm3860_vm1, %v3773_v13, %v6801_v34  ;;  %v3805_v30 = vrot.slane %v5098_v15, %v5570_v5  ;;  %v2363_v49 = vpop.xlane.xlu0 %2362  ;;  %5125 = vrcp.f32 %v2923_v16 }
 0x1d5   : > { %v5102_v48 = vpop.eup %5101  ;;  %v4224_v8 = vmul.f32 -1.442695, %v2363_v49  ;;  %v2939_v33 = vadd.f32 1.0, %v5100_v35  ;;  %5127 = vpow2.f32 %v4216_v29 }
 0x1d6   : > { %v5104_v59 = vpop.eup %5103  ;;  %v6839_v60 = vsel %vm3860_vm1, %v3805_v30, %v6806_v63  ;;  %v3837_v0 = vrot.slane %v5102_v48, %v5570_v5  ;;  %v2379_v7 = vpop.xlane.xlu1 %2378  ;;  %5129 = vrcp.f32 %v2931_v11 }
 0x1d7   : > { %v5106_v34 = vpop.eup %5105  ;;  %v4232_v21 = vmul.f32 -1.442695, %v2379_v7  ;;  %v2947_v24 = vadd.f32 1.0, %v5104_v59  ;;  %5131 = vpow2.f32 %v4224_v8 }
 0x1d8   : > { %v5108_v54 = vpop.eup %5107  ;;  %v6843_v43 = vsel %vm3860_vm1, %v3837_v0, %v3970_v20  ;;  %v2395_v50 = vpop.xlane.xlu0 %2394  ;;  %v2955_v6 = vadd.f32 1.0, %v5106_v34  ;;  %5133 = vrcp.f32 %v2939_v33 }
 0x1d9   : > { %v5110_v19 = vpop.eup %5109  ;;  %v2908_v9 = vadd.f32 1.0, %v5108_v54  ;;  %5135 = vpow2.f32 %v4232_v21  ;;  %v4240_v28 = vmul.f32 -1.442695, %v2395_v50 }
 0x1da   : > { %v5112_v63 = vpop.eup %5111  ;;  %v2411_v27 = vpop.xlane.xlu1 %2410  ;;  %v2916_v4 = vadd.f32 1.0, %v5110_v19  ;;  %5137 = vrcp.f32 %v2947_v24 }
 0x1db   : > { %v5114_v32 = vpop.eup %5113  ;;  %v2924_v10 = vadd.f32 1.0, %v5112_v63  ;;  %5139 = vrcp.f32 %v2955_v6  ;;  %v4248_v37 = vmul.f32 -1.442695, %v2411_v27 }
 0x1dc   : > { %v2427_v44 = vpop.xlane.xlu0 %2426  ;;  %v5116_v56 = vpop.eup %5115  ;;  %5141 = vrcp.f32 %v2908_v9  ;;  %v2932_v20 = vadd.f32 1.0, %v5114_v32 }
 0x1dd   : > { %v6845_v45 = vpop.eup %5117  ;;  %5143 = vrcp.f32 %v2916_v4  ;;  %v4256_v57 = vmul.f32 -1.442695, %v2427_v44  ;;  %v2940_v52 = vadd.f32 1.0, %v5116_v56 }
 0x1de   : > { %v2443_v31 = vpop.xlane.xlu1 %2442  ;;  %v5120_v12 = vpop.eup %5119  ;;  %5145 = vrcp.f32 %v2924_v10 }
 0x1df   : > { %v6847_v18 = vpop.eup %5121  ;;  %5147 = vpow2.f32 %v4240_v28  ;;  %v4264_v53 = vmul.f32 -1.442695, %v2443_v31  ;;  %v2948_v14 = vadd.f32 1.0, %v5120_v12 }
 0x1e0   : > { %v2349_v58 = vpop.xlane.xlu0 %2348  ;;  %v5124_v40 = vpop.eup %5123  ;;  %5149 = vrcp.f32 %v2932_v20 }
 0x1e1   : > { %v6849_v51 = vpop.eup %5125  ;;  %5151 = vpow2.f32 %v4248_v37  ;;  %v4217_v38 = vmul.f32 -1.442695, %v2349_v58  ;;  %v2956_v41 = vadd.f32 1.0, %v5124_v40 }
 0x1e2   : > { %v2365_v1 = vpop.xlane.xlu1 %2364  ;;  %v5128_v42 = vpop.eup %5127  ;;  %5153 = vpow2.f32 %v4256_v57 }
 0x1e3   : > { %v6851_v3 = vpop.eup %5129  ;;  %5155 = vrcp.f32 %v2940_v52  ;;  %v4225_v47 = vmul.f32 -1.442695, %v2365_v1  ;;  %v2909_v17 = vadd.f32 1.0, %v5128_v42 }
 0x1e4   : > { %v2381_v55 = vpop.xlane.xlu0 %2380  ;;  %v5132_v61 = vpop.eup %5131  ;;  %5157 = vpow2.f32 %v4264_v53 }
 0x1e5   : > { %v6853_v36 = vpop.eup %5133  ;;  %5159 = vrcp.f32 %v2948_v14  ;;  %v4233_v23 = vmul.f32 -1.442695, %v2381_v55  ;;  %v2917_v16 = vadd.f32 1.0, %v5132_v61 }
 0x1e6   : > { %v2397_v2 = vpop.xlane.xlu1 %2396  ;;  %v5136_v46 = vpop.eup %5135  ;;  %5161 = vpow2.f32 %v4217_v38 }
 0x1e7   : > { %v6855_v15 = vpop.eup %5137  ;;  %5163 = vrcp.f32 %v2956_v41  ;;  %v4241_v29 = vmul.f32 -1.442695, %v2397_v2  ;;  %v2925_v48 = vadd.f32 1.0, %v5136_v46 }
 0x1e8   : > { %v2413_v13 = vpop.xlane.xlu0 %2412  ;;  %v6857_v30 = vpop.eup %5139  ;;  %5165 = vpow2.f32 %v4225_v47 }
 0x1e9   : > { %v6859_v49 = vpop.eup %5141  ;;  %5167 = vrcp.f32 %v2909_v17  ;;  %v4249_v0 = vmul.f32 -1.442695, %v2413_v13 }
 0x1ea   : > { %v2429_v35 = vpop.xlane.xlu1 %2428  ;;  %v6861_v59 = vpop.eup %5143  ;;  %5169 = vpow2.f32 %v4233_v23 }
 0x1eb   : > { %v6863_v8 = vpop.eup %5145  ;;  %5171 = vrcp.f32 %v2917_v16  ;;  %v4257_v33 = vmul.f32 -1.442695, %v2429_v35 }
 0x1ec   : > { %v2445_v11 = vpop.xlane.xlu0 %2444  ;;  %v5148_v34 = vpop.eup %5147  ;;  %5173 = vpow2.f32 %v4241_v29 }
 0x1ed   : > { %v6865_v21 = vpop.eup %5149  ;;  %5175 = vrcp.f32 %v2925_v48  ;;  %v4265_v24 = vmul.f32 -1.442695, %v2445_v11  ;;  %v2933_v32 = vadd.f32 1.0, %v5148_v34 }
 0x1ee   : > { %v2351_v7 = vpop.xlane.xlu1 %2350  ;;  %v5152_v19 = vpop.eup %5151  ;;  %5177 = vpow2.f32 %v4249_v0 }
 0x1ef   : > { %v4218_v54 = vmul.f32 -1.442695, %v2351_v7  ;;  %v5154_v6 = vpop.eup %5153  ;;  %v2941_v31 = vadd.f32 1.0, %v5152_v19 }
 0x1f0   : > { %v2367_v50 = vpop.xlane.xlu0 %2366  ;;  %v6867_v9 = vpop.eup %5155  ;;  %v2949_v12 = vadd.f32 1.0, %v5154_v6 }
 0x1f1   : > { %v4226_v63 = vmul.f32 -1.442695, %v2367_v50  ;;  %5179 = vpow2.f32 %v4218_v54  ;;  %v5158_v44 = vpop.eup %5157 }
 0x1f2   : > { %v2383_v27 = vpop.xlane.xlu1 %2382  ;;  %5181 = vpow2.f32 %v4257_v33  ;;  %v6869_v28 = vpop.eup %5159  ;;  %v2957_v47 = vadd.f32 1.0, %v5158_v44 }
 0x1f3   : > { %v4234_v4 = vmul.f32 -1.442695, %v2383_v27  ;;  %5183 = vpow2.f32 %v4226_v63  ;;  %v5162_v20 = vpop.eup %5161 }
 0x1f4   : > { %v2399_v10 = vpop.xlane.xlu0 %2398  ;;  %5185 = vpow2.f32 %v4265_v24  ;;  %v6871_v58 = vpop.eup %5163  ;;  %v2910_v53 = vadd.f32 1.0, %v5162_v20 }
 0x1f5   : > { %v4242_v56 = vmul.f32 -1.442695, %v2399_v10  ;;  %5187 = vpow2.f32 %v4234_v4  ;;  %v5166_v52 = vpop.eup %5165  ;;  %v3649_v4 = vrot.slane %v6845_v45, %v5570_v5 }
 0x1f6   : > { %v2415_v37 = vpop.xlane.xlu1 %2414  ;;  %5189 = vrcp.f32 %v2933_v32  ;;  %v6873_v40 = vpop.eup %5167  ;;  %v2918_v41 = vadd.f32 1.0, %v5166_v52  ;;  %v3809_v52 = vrot.slane %v6855_v15, %v5570_v5 }
 0x1f7   : > { %v4250_v57 = vmul.f32 -1.442695, %v2415_v37  ;;  %5191 = vpow2.f32 %v4242_v56  ;;  %v5170_v55 = vpop.eup %5169  ;;  %v3713_v56 = vrot.slane %v6849_v51, %v5570_v5  ;;  %v3745_v37 = vrot.slane %v6851_v3, %v5570_v5 }
 0x1f8   : > { %v2431_v1 = vpop.xlane.xlu0 %2430  ;;  %5193 = vrcp.f32 %v2941_v31  ;;  %v6875_v38 = vpop.eup %5171  ;;  %v2926_v13 = vadd.f32 1.0, %v5170_v55  ;;  %v3681_v31 = vrot.slane %v6847_v18, %v5570_v5  ;;  %v3653_v18 = vrot.slane %v6859_v49, %v5570_v5 }
 0x1f9   : > { %v4258_v14 = vmul.f32 -1.442695, %v2431_v1  ;;  %5195 = vpow2.f32 %v4250_v57  ;;  %v5174_v61 = vpop.eup %5173  ;;  %v3930_v51 = vsel %vm3862_vm2, %v3649_v4, %v6814_v22  ;;  %v3944_v15 = vsel %vm3862_vm2, %v3713_v56, %v6824_v25 }
 0x1fa   : > { %v2447_v42 = vpop.xlane.xlu1 %2446  ;;  %5197 = vrcp.f32 %v2949_v12  ;;  %v6877_v17 = vpop.eup %5175  ;;  %v2934_v16 = vadd.f32 1.0, %v5174_v61  ;;  %v3777_v12 = vrot.slane %v6853_v36, %v5570_v5  ;;  %v3937_v36 = vsel %vm3862_vm2, %v3681_v31, %v6819_v39 }
 0x1fb   : > { %v4266_v2 = vmul.f32 -1.442695, %v2447_v42  ;;  %5199 = vpow2.f32 %v4258_v14  ;;  %v5178_v46 = vpop.eup %5177  ;;  %v3685_v49 = vrot.slane %v6861_v59, %v5570_v5  ;;  %v3951_v22 = vsel %vm3862_vm2, %v3745_v37, %v6829_v62 }
 0x1fc   : > { %5201 = vrcp.f32 %v2910_v53  ;;  %v2942_v11 = vadd.f32 1.0, %v5178_v46  ;;  %v3657_v53 = vrot.slane %v6873_v40, %v5570_v5  ;;  %v3958_v40 = vsel %vm3862_vm2, %v3777_v12, %v6834_v26 }
 0x1fd   : > { %5203 = vpow2.f32 %v4266_v2  ;;  %v3965_v25 = vsel %vm3862_vm2, %v3809_v52, %v6839_v60  ;;  %v3931_v2 = vsel %vm3864_vm3, %v3653_v18, %v3930_v51  ;;  %v3717_v59 = vrot.slane %v6863_v8, %v5570_v5 }
 0x1fe   : > { %v5180_v23 = vpop.eup %5179  ;;  %5205 = vrcp.f32 %v2918_v41  ;;  %v3689_v41 = vrot.slane %v6875_v38, %v5570_v5  ;;  %v3841_v62 = vrot.slane %v6857_v30, %v5570_v5  ;;  %v3932_v26 = vsel %vm3866_vm4, %v3657_v53, %v3931_v2 }
 0x1ff   : > { %v5182_v35 = vpop.eup %5181  ;;  %5207 = vrcp.f32 %v2957_v47  ;;  %v2911_v29 = vadd.f32 1.0, %v5180_v23  ;;  %v3721_v38 = vrot.slane %v6877_v17, %v5570_v5  ;;  %v3938_v46 = vsel %vm3864_vm3, %v3685_v49, %v3937_v36 }
 0x200   : > { %v5184_v48 = vpop.eup %5183  ;;  %5209 = vrcp.f32 %v2926_v13  ;;  %v2950_v33 = vadd.f32 1.0, %v5182_v35  ;;  %v3749_v8 = vrot.slane %v6865_v21, %v5570_v5  ;;  %v3939_v30 = vsel %vm3866_vm4, %v3689_v41, %v3938_v46 }
 0x201   : > { %v5186_v0 = vpop.eup %5185  ;;  %5211 = vrcp.f32 %v2911_v29  ;;  %v2919_v7 = vadd.f32 1.0, %v5184_v48  ;;  %v3781_v21 = vrot.slane %v6867_v9, %v5570_v5  ;;  %v3845_v12 = vrot.slane %v6871_v58, %v5570_v5 }
 0x202   : > { %v5188_v34 = vpop.eup %5187  ;;  %5213 = vrcp.f32 %v2934_v16  ;;  %v2958_v24 = vadd.f32 1.0, %v5186_v0  ;;  %v3945_v0 = vsel %vm3864_vm3, %v3717_v59, %v3944_v15  ;;  %v3952_v9 = vsel %vm3864_vm3, %v3749_v8, %v3951_v22 }
 0x203   : > { %v6879_v54 = vpop.eup %5189  ;;  %5215 = vrcp.f32 %v2919_v7  ;;  %v2927_v50 = vadd.f32 1.0, %v5188_v34  ;;  %v3972_v36 = vsel %vm3862_vm2, %v3841_v62, %v6843_v43 }
 0x204   : > { %v5192_v19 = vpop.eup %5191  ;;  %5217 = vrcp.f32 %v2942_v11  ;;  %v3753_v29 = vrot.slane %v6879_v54, %v5570_v5  ;;  %v3946_v54 = vsel %vm3866_vm4, %v3721_v38, %v3945_v0 }
 0x205   : > { %v6881_v63 = vpop.eup %5193  ;;  %5219 = vrcp.f32 %v2927_v50  ;;  %v2935_v6 = vadd.f32 1.0, %v5192_v19 }
 0x206   : > { %v5196_v27 = vpop.eup %5195  ;;  %5221 = vrcp.f32 %v2950_v33  ;;  %v3785_v50 = vrot.slane %v6881_v63, %v5570_v5  ;;  %v3953_v63 = vsel %vm3866_vm4, %v3753_v29, %v3952_v9 }
 0x207   : > { %v6883_v32 = vpop.eup %5197  ;;  %5223 = vrcp.f32 %v2935_v6  ;;  %v2943_v44 = vadd.f32 1.0, %v5196_v27  ;;  %v3813_v27 = vrot.slane %v6869_v28, %v5570_v5  ;;  %v3959_v28 = vsel %vm3864_vm3, %v3781_v21, %v3958_v40 }
 0x208   : > { %v5200_v10 = vpop.eup %5199  ;;  %5225 = vrcp.f32 %v2958_v24  ;;  %v3817_v31 = vrot.slane %v6883_v32, %v5570_v5  ;;  %v3960_v52 = vsel %vm3866_vm4, %v3785_v50, %v3959_v28 }
 0x209   : > { %v5202_v20 = vpop.eup %5201  ;;  %5227 = vrcp.f32 %v2943_v44  ;;  %v2951_v57 = vadd.f32 1.0, %v5200_v10  ;;  %v3966_v53 = vsel %vm3864_vm3, %v3813_v27, %v3965_v25 }
 0x20a   : > { %v5204_v45 = vpop.eup %5203  ;;  %v3661_v55 = vrot.slane %v5202_v20, %v5570_v5 }
 0x20b   : > { %v5206_v1 = vpop.eup %5205  ;;  %5229 = vrcp.f32 %v2951_v57  ;;  %v2959_v3 = vadd.f32 1.0, %v5204_v45 }
 0x20c   : > { %v6903_v14 = vpop.eup %5207  ;;  %v3693_v61 = vrot.slane %v5206_v1, %v5570_v5  ;;  %v3933_v23 = vsel %vm3868_vm5, %v3661_v55, %v3932_v26 }
 0x20d   : > { %v5210_v42 = vpop.eup %5209  ;;  %5231 = vrcp.f32 %v2959_v3  ;;  %v3849_v32 = vrot.slane %v6903_v14, %v5570_v5  ;;  %v3967_v14 = vsel %vm3866_vm4, %v3817_v31, %v3966_v53 }
 0x20e   : > { %v5212_v39 = vpop.eup %5211  ;;  %v3725_v16 = vrot.slane %v5210_v42, %v5570_v5  ;;  %v3940_v7 = vsel %vm3868_vm5, %v3693_v61, %v3939_v30  ;;  %v3973_v42 = vsel %vm3864_vm3, %v3845_v12, %v3972_v36 }
 0x20f   : > { %v5214_v47 = vpop.eup %5213  ;;  %v3665_v13 = vrot.slane %v5212_v39, %v5570_v5  ;;  %v3974_v40 = vsel %vm3866_vm4, %v3849_v32, %v3973_v42 }
 0x210   : > { %v5216_v60 = vpop.eup %5215  ;;  %v3757_v34 = vrot.slane %v5214_v47, %v5570_v5  ;;  %v3947_v4 = vsel %vm3868_vm5, %v3725_v16, %v3946_v54 }
 0x211   : > { %v5218_v35 = vpop.eup %5217  ;;  %v3934_v17 = vsel %vm3870_vm6, %v3665_v13, %v3933_v23  ;;  %v3697_v48 = vrot.slane %v5216_v60, %v5570_v5 }
 0x212   : > { %v5220_v11 = vpop.eup %5219  ;;  %4003 = vst.msk [vmem:[%s6520_s11 + $0x48] sm:$0xff] %vm3993_vm7, %v3934_v17  ;;  %v3789_v44 = vrot.slane %v5218_v35, %v5570_v5  ;;  %v3954_v57 = vsel %vm3868_vm5, %v3757_v34, %v3953_v63 }
 0x213   : > { %v5222_v33 = vpop.eup %5221  ;;  %v3941_v19 = vsel %vm3870_vm6, %v3697_v48, %v3940_v7  ;;  %v3729_v24 = vrot.slane %v5220_v11, %v5570_v5 }
 0x214   : > { %v5224_v6 = vpop.eup %5223  ;;  %4004 = vst.msk [vmem:[%s6520_s11 + $0x50] sm:$0xff] %vm3993_vm7, %v3941_v19  ;;  %v3821_v45 = vrot.slane %v5222_v33, %v5570_v5  ;;  %v3961_v58 = vsel %vm3868_vm5, %v3789_v44, %v3960_v52 }
 0x215   : > { %v5226_v10 = vpop.eup %5225  ;;  %v3948_v56 = vsel %vm3870_vm6, %v3729_v24, %v3947_v4  ;;  %v3761_v20 = vrot.slane %v5224_v6, %v5570_v5 }
 0x216   : > { %v5228_v37 = vpop.eup %5227  ;;  %4005 = vst.msk [vmem:[%s6520_s11 + $0x58] sm:$0xff] %vm3993_vm7, %v3948_v56  ;;  %v3853_v3 = vrot.slane %v5226_v10, %v5570_v5  ;;  %v3968_v22 = vsel %vm3868_vm5, %v3821_v45, %v3967_v14 }
 0x217   : > { %v3955_v18 = vsel %vm3870_vm6, %v3761_v20, %v3954_v57  ;;  %v3793_v1 = vrot.slane %v5228_v37, %v5570_v5 }
 0x218   : > { %v5230_v51 = vpop.eup %5229  ;;  %4006 = vst.msk [vmem:[%s6520_s11 + $0x60] sm:$0xff] %vm3993_vm7, %v3955_v18  ;;  %v3975_v43 = vsel %vm3868_vm5, %v3853_v3, %v3974_v40 }
 0x219   : > { %v3962_v15 = vsel %vm3870_vm6, %v3793_v1, %v3961_v58  ;;  %v3825_v49 = vrot.slane %v5230_v51, %v5570_v5 }
 0x21a   : > { %v5232_v55 = vpop.eup %5231  ;;  %4007 = vst.msk [vmem:[%s6520_s11 + $0x68] sm:$0xff] %vm3993_vm7, %v3962_v15 }
 0x21b   : > { %v3969_v41 = vsel %vm3870_vm6, %v3825_v49, %v3968_v22  ;;  %v3857_v39 = vrot.slane %v5232_v55, %v5570_v5 }
 0x21c   : > { %4008 = vst.msk [vmem:[%s6520_s11 + $0x70] sm:$0xff] %vm3993_vm7, %v3969_v41 }
 0x21d   : > { %v3976_v25 = vsel %vm3870_vm6, %v3857_v39, %v3975_v43 }
 0x21e   : > { %4009 = vst.msk [vmem:[%s6520_s11 + $0x78] sm:$0xff] %vm3993_vm7, %v3976_v25 }
 0x21f PF: > { %p16_p4 = scmp.ge.s32.totalorder %s5405_s17, 6   ;;  %s7038_s12 = smov %s5347_s13 }
 0x220   : > { %s7039_s13 = smov %s5351_s14  ;;  %s7040_s14 = smov %s5415_s20 }
 0x221   : > { %s7041_s15 = smov %s5405_s17  ;;  %18 = sbr.rel (!%p16_p4) target bundleno = 5 (0x5), region = 96 }
 0x226   :  { %4032 = vsyncpa [#allocation3], 1 }
 0x227   :  { %4034 = vsyncpa [#allocation3 + $0x1], 1 }
 0x228   :  { %4035 = vsyncpa [#allocation5], 1 }
 0x229   :  { %4037 = vsyncpa [#allocation5 + $0x1], 1 }

</bundles_post_ra>
